<compile_context>
chip_gen: v6e
topology: v6e:2x2x1
jax: 0.10.0
libtpu: 0.0.40
codegen_flags: <defaults>
</compile_context>

<pallas_src>
import numpy as np
import jax
import jax.numpy as jnp
from jax.experimental import pallas as pl
from jax.experimental.pallas import tpu as pltpu

# ---- hyper-parameters (mirror EncoderSRNN.__init__ arguments, small shapes) ----
INPUT_SIZE  = 16     # vocab size
HIDDEN      = 32
NSTACK      = 2
STACK_DEPTH = 2
STACK_SIZE  = 8
ELEM        = 4      # stack_elem_size
NACT        = 3
PAD         = 0
SEQ_LEN     = 8
BATCH       = 2

SE   = STACK_SIZE * ELEM                      # 32 lanes per stack
DE   = STACK_DEPTH * ELEM                     # 8 read lanes per stack
NSE  = NSTACK * SE                            # 64 packed stack lanes
LOG  = NSTACK * NACT                          # 6 action logits
NOUT = HIDDEN + LOG + NSTACK * ELEM           # 46 fused output columns


def shift_matrix(n):
    W_up = np.eye(n)
    for i in range(n - 1):
        W_up[i, :] = W_up[i + 1, :]
    W_up[n - 1, :] *= 0
    W_down = np.eye(n)
    for i in range(n - 1, 0, -1):
        W_down[i, :] = W_down[i - 1, :]
    W_down[0, :] *= 0
    return W_up, W_down


def _any_of(terms):
    out = terms[0]
    for t in terms[1:]:
        out = out | t
    return out


# ----------------------------- Pallas kernel -----------------------------------
def _srnn_kernel(tokbias_ref, wh_ref, ws_ref, emptyfull_ref,
                 out_ref, hfin_ref, stfin_ref):
    f32 = jnp.float32
    i32 = jnp.int32
    T, B, _ = tokbias_ref.shape
    H = HIDDEN
    S = STACK_SIZE
    E = ELEM

    Wh = wh_ref[...]            # (H, NOUT)   hidden-side fused weight
    Ws = ws_ref[...]            # (NSE, NOUT) stack-side weight (read lanes only)
    emptyfull = emptyfull_ref[...]   # (1, NSE) empty elem repeated on every row

    # ---- shape-derived constants, built once from iota + compares (no HBM) ----
    lane = jax.lax.broadcasted_iota(i32, (1, NSE), 1)
    # interior rows 1..S-2 of each stack keep the blended value; rows 0 and S-1
    # are exactly the lanes the pltpu.roll shifts wrap across, and are rewritten
    # by the push-value / empty-element terms below. Keep these in sync.
    imask = _any_of([(lane >= n * SE + E) & (lane < n * SE + (S - 1) * E)
                     for n in range(NSTACK)]).astype(f32)
    lastm = _any_of([(lane >= n * SE + (S - 1) * E) & (lane < (n + 1) * SE)
                     for n in range(NSTACK)]).astype(f32)
    erow = emptyfull * lastm                              # empty elem at row S-1

    r6 = jax.lax.broadcasted_iota(i32, (LOG, NSE), 0)
    c6 = jax.lax.broadcasted_iota(i32, (LOG, NSE), 1)
    in_stack = [(c6 >= n * SE) & (c6 < (n + 1) * SE) for n in range(NSTACK)]
    Mpush = _any_of([(r6 == n * NACT + 0) & in_stack[n] for n in range(NSTACK)]).astype(f32)
    Mpop  = _any_of([(r6 == n * NACT + 1) & in_stack[n] for n in range(NSTACK)]).astype(f32)
    Mnoop = _any_of([(r6 == n * NACT + 2) & in_stack[n] for n in range(NSTACK)]).astype(f32)

    rs = jax.lax.broadcasted_iota(i32, (LOG, LOG), 0)
    cs = jax.lax.broadcasted_iota(i32, (LOG, LOG), 1)
    Msum = _any_of([(rs >= n * NACT) & (rs < (n + 1) * NACT)
                    & (cs >= n * NACT) & (cs < (n + 1) * NACT)
                    for n in range(NSTACK)]).astype(f32)

    rp = jax.lax.broadcasted_iota(i32, (NSTACK * E, NSE), 0)
    cp = jax.lax.broadcasted_iota(i32, (NSTACK * E, NSE), 1)
    # scatter push-vals (lane n*E+e) to the row-0 lanes of stack n (lane n*SE+e)
    Mpv = _any_of([(rp >= n * E) & (rp < (n + 1) * E) & ((cp - rp) == n * (SE - E))
                   for n in range(NSTACK)]).astype(f32)

    # hoist broadcasts out of the loop (JAX does not CSE broadcast_in_dim)
    imask_b = jnp.broadcast_to(imask, (B, NSE))
    erow_b = jnp.broadcast_to(erow, (B, NSE))

    # initial state (init_hidden / init_stack of the module)
    hidden = jnp.zeros((B, H), f32)
    packed = jnp.broadcast_to(emptyfull, (B, NSE))        # every row = empty_elem

    for t in range(T):   # T small & static; switch to lax.fori_loop if T grows
        # fused = [mid | act logits | push vals] ; token term + biases precomputed
        fused = (jnp.dot(hidden, Wh, preferred_element_type=f32)
                 + jnp.dot(packed, Ws, preferred_element_type=f32)
                 + tokbias_ref[t])
        th = jnp.tanh(fused)                              # one EUP pass per step
        logits = fused[:, H:H + LOG]                      # pre-tanh act logits
        pv64 = jnp.dot(th[:, H + LOG:], Mpv,
                       preferred_element_type=f32)        # push vals at row-0 lanes

        # fused two-stack softmax: subtracting the per-row global max is valid
        # for both groups (softmax is shift invariant per group).
        m = jnp.max(logits, axis=-1, keepdims=True)
        e = jnp.exp(logits - m)
        dens = jnp.dot(e, Msum, preferred_element_type=f32)   # per-group sums
        probs = e * pl.reciprocal(dens, approx=True)

        # lane broadcasts of the per-stack action probs via tiny constant matmuls
        push_w = jnp.dot(probs, Mpush, preferred_element_type=f32)   # (B, NSE)
        pop_w  = jnp.dot(probs, Mpop,  preferred_element_type=f32)
        noop_w = jnp.dot(probs, Mnoop, preferred_element_type=f32)

        # stack shifts as lane rotations over the packed buffer; wrap-around
        # lanes are exactly the row-0 / row-(S-1) lanes masked out by imask.
        down = pltpu.roll(packed, shift=E, axis=1)         # row s <- row s-1
        up   = pltpu.roll(packed, shift=NSE - E, axis=1)   # row s <- row s+1

        blended = push_w * down + pop_w * up + noop_w * packed
        packed = imask_b * blended + push_w * pv64 + erow_b

        hidden = th[:, :H]                                 # tanh(mid)
        out_ref[:, t * H:(t + 1) * H] = hidden             # lane-dense writeback

    hfin_ref[...] = hidden
    stfin_ref[...] = packed


# ----------------------------- wrapper ------------------------------------------
def encoder_srnn_pallas(tokens, p):
    T, B = tokens.shape
    H, N, S, E, D = HIDDEN, NSTACK, STACK_SIZE, ELEM, STACK_DEPTH
    f32 = jnp.float32

    # token contribution + all biases precomputed outside the kernel
    # (emb row PAD is zero, so padding_idx semantics are preserved).
    tokproj = p['emb'][tokens] @ p['w_i2h'].T                      # (T, B, H)
    bias_mid = p['b_i2h'] + p['b_h2h'] + N * p['b_s2h']            # (H,)
    tok_bias = jnp.concatenate([
        tokproj + bias_mid,
        jnp.broadcast_to(p['b_h2a'], (T, B, N * NACT)),
        jnp.broadcast_to(p['b_h2s'], (T, B, N * E)),
    ], axis=-1).astype(f32)                                        # (T, B, NOUT)

    # hidden-side fused weight: cols = [mid(H) | act logits(N*NACT) | push vals(N*E)]
    Wh = jnp.concatenate([p['w_h2h'].T, p['w_h2a'].T, p['w_h2s'].T],
                         axis=-1).astype(f32)                      # (H, NOUT)

    # stack-side weight: nonzero rows only at the top-D read lanes of each stack
    Ws = jnp.zeros((NSE, NOUT), f32)
    for n in range(N):
        Ws = Ws.at[n * SE:n * SE + D * E, 0:H].set(p['w_s2h'].T)

    emptyfull = jnp.tile(p['empty'].astype(f32), (1, N * S))       # (1, NSE)

    ins = [tok_bias, Wh, Ws, emptyfull]

    def full_spec(a):
        nd = a.ndim
        return pl.BlockSpec(a.shape, lambda i, _nd=nd: (0,) * _nd)

    out_shape = (jax.ShapeDtypeStruct((B, T * H), f32),
                 jax.ShapeDtypeStruct((B, H), f32),
                 jax.ShapeDtypeStruct((B, NSE), f32))
    out_specs = (pl.BlockSpec((B, T * H), lambda i: (0, 0)),
                 pl.BlockSpec((B, H), lambda i: (0, 0)),
                 pl.BlockSpec((B, NSE), lambda i: (0, 0)))

    out_flat, h_fin, st_fin = pl.pallas_call(
        _srnn_kernel,
        grid_spec=pltpu.PrefetchScalarGridSpec(
            num_scalar_prefetch=0,
            grid=(1,),                 # single invocation; recurrence lives inside
            in_specs=[full_spec(a) for a in ins],
            out_specs=out_specs),
        out_shape=out_shape,
        compiler_params=pltpu.CompilerParams(
            dimension_semantics=("arbitrary",)),
    )(*ins)

    outs = out_flat.reshape(B, T, H).transpose(1, 0, 2)            # (T, B, H)
    stacks_final = st_fin.reshape(B, N, S, E)
    return outs, h_fin, stacks_final


# ----------------------------- pure-JAX reference -------------------------------
def encoder_srnn_reference(tokens, p):
    T, B = tokens.shape
    H, N, S, E, D = HIDDEN, NSTACK, STACK_SIZE, ELEM, STACK_DEPTH
    W_up, W_down = shift_matrix(S)
    W_up = jnp.asarray(W_up, jnp.float32)
    W_down = jnp.asarray(W_down, jnp.float32)

    embs = p['emb'][tokens]
    hidden = jnp.zeros((B, H), jnp.float32)
    stacks = jnp.broadcast_to(p['empty'][None, None, :, :], (B, N, S, E))
    outs = []
    for t in range(T):
        x = embs[t]
        mid = x @ p['w_i2h'].T + p['b_i2h'] + hidden @ p['w_h2h'].T + p['b_h2h']
        sv = stacks[:, :, :D, :].reshape(B, N, D * E)
        read = sv @ p['w_s2h'].T + p['b_s2h']                    # (B, N, H)
        mid = mid + read.sum(axis=1)
        act = (hidden @ p['w_h2a'].T + p['b_h2a']).reshape(B, N, NACT)
        act = jax.nn.softmax(act, axis=2)
        p_push, p_pop, p_noop = act[:, :, 0:1], act[:, :, 1:2], act[:, :, 2:3]
        pv = jnp.tanh((hidden @ p['w_h2s'].T + p['b_h2s']).reshape(B, N, E))
        down = jnp.einsum('st,bnte->bnse', W_down, stacks)
        up = jnp.einsum('st,bnte->bnse', W_up, stacks)
        new = (p_push[..., None] * down + p_pop[..., None] * up
               + p_noop[..., None] * stacks)
        new = new.at[:, :, 0, :].set(p_push * pv)
        new = new.at[:, :, S - 1, :].set(jnp.broadcast_to(p['empty'], (B, N, E)))
        stacks = new
        hidden = jnp.tanh(mid)
        outs.append(hidden)
    return jnp.stack(outs), hidden, stacks


# ----------------------------- params / main ------------------------------------
def init_params(key):
    ks = jax.random.split(key, 7)

    def lin(k, out_dim, in_dim):
        bound = 1.0 / np.sqrt(in_dim)
        kw, kb = jax.random.split(k)
        w = jax.random.uniform(kw, (out_dim, in_dim), jnp.float32, -bound, bound)
        b = jax.random.uniform(kb, (out_dim,), jnp.float32, -bound, bound)
        return w, b

    emb = 0.5 * jax.random.normal(ks[0], (INPUT_SIZE, HIDDEN), jnp.float32)
    emb = emb.at[PAD].set(0.0)                        # padding_idx row is zero
    w_h2h, b_h2h = lin(ks[1], HIDDEN, HIDDEN)
    w_i2h, b_i2h = lin(ks[2], HIDDEN, HIDDEN)
    w_h2a, b_h2a = lin(ks[3], NSTACK * NACT, HIDDEN)
    w_h2s, b_h2s = lin(ks[4], NSTACK * ELEM, HIDDEN)
    w_s2h, b_s2h = lin(ks[5], HIDDEN, ELEM * STACK_DEPTH)
    empty = jax.random.normal(ks[6], (1, ELEM), jnp.float32)
    return dict(emb=emb, w_h2h=w_h2h, b_h2h=b_h2h, w_i2h=w_i2h, b_i2h=b_i2h,
                w_h2a=w_h2a, b_h2a=b_h2a, w_h2s=w_h2s, b_h2s=b_h2s,
                w_s2h=w_s2h, b_s2h=b_s2h, empty=empty)


if __name__ == "__main__":
    key = jax.random.PRNGKey(0)
    kp, kt = jax.random.split(key)
    params = init_params(kp)
    tokens = jax.random.randint(kt, (SEQ_LEN, BATCH), 0, INPUT_SIZE, dtype=jnp.int32)

    outs, h_fin, st_fin = encoder_srnn_pallas(tokens, params)
    jax.block_until_ready((outs, h_fin, st_fin))

    r_outs, r_h, r_st = encoder_srnn_reference(tokens, params)
    np.testing.assert_allclose(np.asarray(outs), np.asarray(r_outs), rtol=2e-2, atol=2e-2)
    np.testing.assert_allclose(np.asarray(h_fin), np.asarray(r_h), rtol=2e-2, atol=2e-2)
    np.testing.assert_allclose(np.asarray(st_fin), np.asarray(r_st), rtol=2e-2, atol=2e-2)

    print("KERNEL_OK")
</pallas_src>

<mosaic_0001>
module attributes {stable_mosaic.version = 11 : i64} {
  func.func @_srnn_kernel(%arg0: i32, %arg1: memref<8x2x46xf32, #tpu.memory_space<vmem>>, %arg2: memref<32x46xf32, #tpu.memory_space<vmem>>, %arg3: memref<64x46xf32, #tpu.memory_space<vmem>>, %arg4: memref<1x64xf32, #tpu.memory_space<vmem>>, %arg5: memref<2x256xf32, #tpu.memory_space<vmem>>, %arg6: memref<2x32xf32, #tpu.memory_space<vmem>>, %arg7: memref<2x64xf32, #tpu.memory_space<vmem>>) attributes {dimension_semantics = [#tpu.dimension_semantics<arbitrary>], iteration_bounds = array<i64: 1>, scalar_prefetch = 0 : i64, scratch_operands = 0 : i64, tpu.core_type = #tpu.core_type<tc>, window_params = [{pipeline_mode = #tpu.pipeline_mode<synchronous>, transform_indices = @transform_0, window_bounds = array<i64: 8, 2, 46>}, {pipeline_mode = #tpu.pipeline_mode<synchronous>, transform_indices = @transform_1, window_bounds = array<i64: 32, 46>}, {pipeline_mode = #tpu.pipeline_mode<synchronous>, transform_indices = @transform_2, window_bounds = array<i64: 64, 46>}, {pipeline_mode = #tpu.pipeline_mode<synchronous>, transform_indices = @transform_3, window_bounds = array<i64: 1, 64>}, {pipeline_mode = #tpu.pipeline_mode<synchronous>, transform_indices = @transform_4, window_bounds = array<i64: 2, 256>}, {pipeline_mode = #tpu.pipeline_mode<synchronous>, transform_indices = @transform_5, window_bounds = array<i64: 2, 32>}, {pipeline_mode = #tpu.pipeline_mode<synchronous>, transform_indices = @transform_6, window_bounds = array<i64: 2, 64>}]} {
    %c0 = arith.constant 0 : index
    %c0_0 = arith.constant 0 : index
    %0 = vector.load %arg2[%c0, %c0_0] : memref<32x46xf32, #tpu.memory_space<vmem>>, vector<32x46xf32>
    %c0_1 = arith.constant 0 : index
    %c0_2 = arith.constant 0 : index
    %1 = vector.load %arg3[%c0_1, %c0_2] : memref<64x46xf32, #tpu.memory_space<vmem>>, vector<64x46xf32>
    %c0_3 = arith.constant 0 : index
    %c0_4 = arith.constant 0 : index
    %2 = vector.load %arg4[%c0_3, %c0_4] : memref<1x64xf32, #tpu.memory_space<vmem>>, vector<1x64xf32>
    %3 = tpu.iota {dimensions = array<i32: 1>} : vector<1x64xi32>
    %c4_i32 = arith.constant 4 : i32
    %4 = vector.broadcast %c4_i32 : i32 to vector<1x64xi32>
    %5 = arith.cmpi sge, %3, %4 : vector<1x64xi32>
    %c28_i32 = arith.constant 28 : i32
    %6 = vector.broadcast %c28_i32 : i32 to vector<1x64xi32>
    %7 = arith.cmpi slt, %3, %6 : vector<1x64xi32>
    %8 = arith.andi %5, %7 : vector<1x64xi1>
    %c36_i32 = arith.constant 36 : i32
    %9 = vector.broadcast %c36_i32 : i32 to vector<1x64xi32>
    %10 = arith.cmpi sge, %3, %9 : vector<1x64xi32>
    %c60_i32 = arith.constant 60 : i32
    %11 = vector.broadcast %c60_i32 : i32 to vector<1x64xi32>
    %12 = arith.cmpi slt, %3, %11 : vector<1x64xi32>
    %13 = arith.andi %10, %12 : vector<1x64xi1>
    %14 = arith.ori %8, %13 : vector<1x64xi1>
    %15 = arith.extui %14 : vector<1x64xi1> to vector<1x64xi32>
    %16 = arith.sitofp %15 : vector<1x64xi32> to vector<1x64xf32>
    %c28_i32_5 = arith.constant 28 : i32
    %17 = vector.broadcast %c28_i32_5 : i32 to vector<1x64xi32>
    %18 = arith.cmpi sge, %3, %17 : vector<1x64xi32>
    %c32_i32 = arith.constant 32 : i32
    %19 = vector.broadcast %c32_i32 : i32 to vector<1x64xi32>
    %20 = arith.cmpi slt, %3, %19 : vector<1x64xi32>
    %21 = arith.andi %18, %20 : vector<1x64xi1>
    %c60_i32_6 = arith.constant 60 : i32
    %22 = vector.broadcast %c60_i32_6 : i32 to vector<1x64xi32>
    %23 = arith.cmpi sge, %3, %22 : vector<1x64xi32>
    %c64_i32 = arith.constant 64 : i32
    %24 = vector.broadcast %c64_i32 : i32 to vector<1x64xi32>
    %25 = arith.cmpi slt, %3, %24 : vector<1x64xi32>
    %26 = arith.andi %23, %25 : vector<1x64xi1>
    %27 = arith.ori %21, %26 : vector<1x64xi1>
    %28 = arith.extui %27 : vector<1x64xi1> to vector<1x64xi32>
    %29 = arith.sitofp %28 : vector<1x64xi32> to vector<1x64xf32>
    %30 = arith.mulf %2, %29 : vector<1x64xf32>
    %31 = tpu.iota {dimensions = array<i32: 0>} : vector<6x64xi32>
    %32 = tpu.iota {dimensions = array<i32: 1>} : vector<6x64xi32>
    %c0_i32 = arith.constant 0 : i32
    %33 = vector.broadcast %c0_i32 : i32 to vector<6x64xi32>
    %34 = arith.cmpi sge, %32, %33 : vector<6x64xi32>
    %c32_i32_7 = arith.constant 32 : i32
    %35 = vector.broadcast %c32_i32_7 : i32 to vector<6x64xi32>
    %36 = arith.cmpi slt, %32, %35 : vector<6x64xi32>
    %37 = arith.andi %34, %36 : vector<6x64xi1>
    %c32_i32_8 = arith.constant 32 : i32
    %38 = vector.broadcast %c32_i32_8 : i32 to vector<6x64xi32>
    %39 = arith.cmpi sge, %32, %38 : vector<6x64xi32>
    %c64_i32_9 = arith.constant 64 : i32
    %40 = vector.broadcast %c64_i32_9 : i32 to vector<6x64xi32>
    %41 = arith.cmpi slt, %32, %40 : vector<6x64xi32>
    %42 = arith.andi %39, %41 : vector<6x64xi1>
    %c0_i32_10 = arith.constant 0 : i32
    %43 = vector.broadcast %c0_i32_10 : i32 to vector<6x64xi32>
    %44 = arith.cmpi eq, %31, %43 : vector<6x64xi32>
    %45 = arith.andi %44, %37 : vector<6x64xi1>
    %c3_i32 = arith.constant 3 : i32
    %46 = vector.broadcast %c3_i32 : i32 to vector<6x64xi32>
    %47 = arith.cmpi eq, %31, %46 : vector<6x64xi32>
    %48 = arith.andi %47, %42 : vector<6x64xi1>
    %49 = arith.ori %45, %48 : vector<6x64xi1>
    %50 = arith.extui %49 : vector<6x64xi1> to vector<6x64xi32>
    %51 = arith.sitofp %50 : vector<6x64xi32> to vector<6x64xf32>
    %c1_i32 = arith.constant 1 : i32
    %52 = vector.broadcast %c1_i32 : i32 to vector<6x64xi32>
    %53 = arith.cmpi eq, %31, %52 : vector<6x64xi32>
    %54 = arith.andi %53, %37 : vector<6x64xi1>
    %c4_i32_11 = arith.constant 4 : i32
    %55 = vector.broadcast %c4_i32_11 : i32 to vector<6x64xi32>
    %56 = arith.cmpi eq, %31, %55 : vector<6x64xi32>
    %57 = arith.andi %56, %42 : vector<6x64xi1>
    %58 = arith.ori %54, %57 : vector<6x64xi1>
    %59 = arith.extui %58 : vector<6x64xi1> to vector<6x64xi32>
    %60 = arith.sitofp %59 : vector<6x64xi32> to vector<6x64xf32>
    %c2_i32 = arith.constant 2 : i32
    %61 = vector.broadcast %c2_i32 : i32 to vector<6x64xi32>
    %62 = arith.cmpi eq, %31, %61 : vector<6x64xi32>
    %63 = arith.andi %62, %37 : vector<6x64xi1>
    %c5_i32 = arith.constant 5 : i32
    %64 = vector.broadcast %c5_i32 : i32 to vector<6x64xi32>
    %65 = arith.cmpi eq, %31, %64 : vector<6x64xi32>
    %66 = arith.andi %65, %42 : vector<6x64xi1>
    %67 = arith.ori %63, %66 : vector<6x64xi1>
    %68 = arith.extui %67 : vector<6x64xi1> to vector<6x64xi32>
    %69 = arith.sitofp %68 : vector<6x64xi32> to vector<6x64xf32>
    %70 = tpu.iota {dimensions = array<i32: 0>} : vector<6x6xi32>
    %71 = tpu.iota {dimensions = array<i32: 1>} : vector<6x6xi32>
    %c0_i32_12 = arith.constant 0 : i32
    %72 = vector.broadcast %c0_i32_12 : i32 to vector<6x6xi32>
    %73 = arith.cmpi sge, %70, %72 : vector<6x6xi32>
    %c3_i32_13 = arith.constant 3 : i32
    %74 = vector.broadcast %c3_i32_13 : i32 to vector<6x6xi32>
    %75 = arith.cmpi slt, %70, %74 : vector<6x6xi32>
    %76 = arith.andi %73, %75 : vector<6x6xi1>
    %c0_i32_14 = arith.constant 0 : i32
    %77 = vector.broadcast %c0_i32_14 : i32 to vector<6x6xi32>
    %78 = arith.cmpi sge, %71, %77 : vector<6x6xi32>
    %79 = arith.andi %76, %78 : vector<6x6xi1>
    %c3_i32_15 = arith.constant 3 : i32
    %80 = vector.broadcast %c3_i32_15 : i32 to vector<6x6xi32>
    %81 = arith.cmpi slt, %71, %80 : vector<6x6xi32>
    %82 = arith.andi %79, %81 : vector<6x6xi1>
    %c3_i32_16 = arith.constant 3 : i32
    %83 = vector.broadcast %c3_i32_16 : i32 to vector<6x6xi32>
    %84 = arith.cmpi sge, %70, %83 : vector<6x6xi32>
    %c6_i32 = arith.constant 6 : i32
    %85 = vector.broadcast %c6_i32 : i32 to vector<6x6xi32>
    %86 = arith.cmpi slt, %70, %85 : vector<6x6xi32>
    %87 = arith.andi %84, %86 : vector<6x6xi1>
    %c3_i32_17 = arith.constant 3 : i32
    %88 = vector.broadcast %c3_i32_17 : i32 to vector<6x6xi32>
    %89 = arith.cmpi sge, %71, %88 : vector<6x6xi32>
    %90 = arith.andi %87, %89 : vector<6x6xi1>
    %c6_i32_18 = arith.constant 6 : i32
    %91 = vector.broadcast %c6_i32_18 : i32 to vector<6x6xi32>
    %92 = arith.cmpi slt, %71, %91 : vector<6x6xi32>
    %93 = arith.andi %90, %92 : vector<6x6xi1>
    %94 = arith.ori %82, %93 : vector<6x6xi1>
    %95 = arith.extui %94 : vector<6x6xi1> to vector<6x6xi32>
    %96 = arith.sitofp %95 : vector<6x6xi32> to vector<6x6xf32>
    %97 = tpu.iota {dimensions = array<i32: 0>} : vector<8x64xi32>
    %98 = tpu.iota {dimensions = array<i32: 1>} : vector<8x64xi32>
    %c0_i32_19 = arith.constant 0 : i32
    %99 = vector.broadcast %c0_i32_19 : i32 to vector<8x64xi32>
    %100 = arith.cmpi sge, %97, %99 : vector<8x64xi32>
    %c4_i32_20 = arith.constant 4 : i32
    %101 = vector.broadcast %c4_i32_20 : i32 to vector<8x64xi32>
    %102 = arith.cmpi slt, %97, %101 : vector<8x64xi32>
    %103 = arith.andi %100, %102 : vector<8x64xi1>
    %104 = arith.subi %98, %97 : vector<8x64xi32>
    %c0_i32_21 = arith.constant 0 : i32
    %105 = vector.broadcast %c0_i32_21 : i32 to vector<8x64xi32>
    %106 = arith.cmpi eq, %104, %105 : vector<8x64xi32>
    %107 = arith.andi %103, %106 : vector<8x64xi1>
    %c4_i32_22 = arith.constant 4 : i32
    %108 = vector.broadcast %c4_i32_22 : i32 to vector<8x64xi32>
    %109 = arith.cmpi sge, %97, %108 : vector<8x64xi32>
    %c8_i32 = arith.constant 8 : i32
    %110 = vector.broadcast %c8_i32 : i32 to vector<8x64xi32>
    %111 = arith.cmpi slt, %97, %110 : vector<8x64xi32>
    %112 = arith.andi %109, %111 : vector<8x64xi1>
    %113 = arith.subi %98, %97 : vector<8x64xi32>
    %c28_i32_23 = arith.constant 28 : i32
    %114 = vector.broadcast %c28_i32_23 : i32 to vector<8x64xi32>
    %115 = arith.cmpi eq, %113, %114 : vector<8x64xi32>
    %116 = arith.andi %112, %115 : vector<8x64xi1>
    %117 = arith.ori %107, %116 : vector<8x64xi1>
    %118 = arith.extui %117 : vector<8x64xi1> to vector<8x64xi32>
    %119 = arith.sitofp %118 : vector<8x64xi32> to vector<8x64xf32>
    %120 = vector.shape_cast %16 : vector<1x64xf32> to vector<1x64xf32>
    %121 = vector.broadcast %120 : vector<1x64xf32> to vector<2x64xf32>
    %122 = vector.shape_cast %30 : vector<1x64xf32> to vector<1x64xf32>
    %123 = vector.broadcast %122 : vector<1x64xf32> to vector<2x64xf32>
    %cst = arith.constant 0.000000e+00 : f32
    %124 = vector.broadcast %cst : f32 to vector<2x32xf32>
    %125 = vector.shape_cast %2 : vector<1x64xf32> to vector<1x64xf32>
    %126 = vector.broadcast %125 : vector<1x64xf32> to vector<2x64xf32>
    %cst_24 = arith.constant dense<0.000000e+00> : vector<2x46xf32>
    %127 = tpu.matmul %124, %0, %cst_24 {dimension_numbers = #tpu.dot_dimension_numbers<[1], [0], [0], [1], [0, 0, 1, 1], [], []>} : vector<2x32xf32>, vector<32x46xf32>, vector<2x46xf32> -> vector<2x46xf32>
    %cst_25 = arith.constant dense<0.000000e+00> : vector<2x46xf32>
    %128 = tpu.matmul %126, %1, %cst_25 {dimension_numbers = #tpu.dot_dimension_numbers<[1], [0], [0], [1], [0, 0, 1, 1], [], []>} : vector<2x64xf32>, vector<64x46xf32>, vector<2x46xf32> -> vector<2x46xf32>
    %129 = arith.addf %127, %128 : vector<2x46xf32>
    %c0_26 = arith.constant 0 : index
    %c0_27 = arith.constant 0 : index
    %c0_28 = arith.constant 0 : index
    %130 = vector.load %arg1[%c0_26, %c0_27, %c0_28] : memref<8x2x46xf32, #tpu.memory_space<vmem>>, vector<1x2x46xf32>
    %131 = vector.shape_cast %130 : vector<1x2x46xf32> to vector<2x46xf32>
    %132 = arith.addf %129, %131 : vector<2x46xf32>
    %133 = math.tanh %132 : vector<2x46xf32>
    %134 = vector.extract_strided_slice %132 {offsets = [0, 32], sizes = [2, 6], strides = [1, 1]} : vector<2x46xf32> to vector<2x6xf32>
    %135 = vector.extract_strided_slice %133 {offsets = [0, 38], sizes = [2, 8], strides = [1, 1]} : vector<2x46xf32> to vector<2x8xf32>
    %cst_29 = arith.constant dense<0.000000e+00> : vector<2x64xf32>
    %136 = tpu.matmul %135, %119, %cst_29 {dimension_numbers = #tpu.dot_dimension_numbers<[1], [0], [0], [1], [0, 0, 1, 1], [], []>} : vector<2x8xf32>, vector<8x64xf32>, vector<2x64xf32> -> vector<2x64xf32>
    %cst_30 = arith.constant dense<0xFF800000> : vector<2xf32>
    %137 = vector.multi_reduction <maximumf>, %134, %cst_30 [1] : vector<2x6xf32> to vector<2xf32>
    %138 = vector.shape_cast %137 : vector<2xf32> to vector<2x1xf32>
    %139 = vector.broadcast %138 : vector<2x1xf32> to vector<2x6xf32>
    %140 = arith.subf %134, %139 : vector<2x6xf32>
    %141 = math.exp %140 : vector<2x6xf32>
    %cst_31 = arith.constant dense<0.000000e+00> : vector<2x6xf32>
    %142 = tpu.matmul %141, %96, %cst_31 {dimension_numbers = #tpu.dot_dimension_numbers<[1], [0], [0], [1], [0, 0, 1, 1], [], []>} : vector<2x6xf32>, vector<6x6xf32>, vector<2x6xf32> -> vector<2x6xf32>
    %143 = tpu.reciprocal %142 {approx = true} : vector<2x6xf32> -> vector<2x6xf32>
    %144 = arith.mulf %141, %143 : vector<2x6xf32>
    %cst_32 = arith.constant dense<0.000000e+00> : vector<2x64xf32>
    %145 = tpu.matmul %144, %51, %cst_32 {dimension_numbers = #tpu.dot_dimension_numbers<[1], [0], [0], [1], [0, 0, 1, 1], [], []>} : vector<2x6xf32>, vector<6x64xf32>, vector<2x64xf32> -> vector<2x64xf32>
    %cst_33 = arith.constant dense<0.000000e+00> : vector<2x64xf32>
    %146 = tpu.matmul %144, %60, %cst_33 {dimension_numbers = #tpu.dot_dimension_numbers<[1], [0], [0], [1], [0, 0, 1, 1], [], []>} : vector<2x6xf32>, vector<6x64xf32>, vector<2x64xf32> -> vector<2x64xf32>
    %cst_34 = arith.constant dense<0.000000e+00> : vector<2x64xf32>
    %147 = tpu.matmul %144, %69, %cst_34 {dimension_numbers = #tpu.dot_dimension_numbers<[1], [0], [0], [1], [0, 0, 1, 1], [], []>} : vector<2x6xf32>, vector<6x64xf32>, vector<2x64xf32> -> vector<2x64xf32>
    %c4_i32_35 = arith.constant 4 : i32
    %148 = tpu.dynamic_rotate %126 by %c4_i32_35 dim 1 : vector<2x64xf32>, i32 -> vector<2x64xf32>
    %c60_i32_36 = arith.constant 60 : i32
    %149 = tpu.dynamic_rotate %126 by %c60_i32_36 dim 1 : vector<2x64xf32>, i32 -> vector<2x64xf32>
    %150 = arith.mulf %145, %148 : vector<2x64xf32>
    %151 = arith.mulf %146, %149 : vector<2x64xf32>
    %152 = arith.addf %150, %151 : vector<2x64xf32>
    %153 = arith.mulf %147, %126 : vector<2x64xf32>
    %154 = arith.addf %152, %153 : vector<2x64xf32>
    %155 = arith.mulf %121, %154 : vector<2x64xf32>
    %156 = arith.mulf %145, %136 : vector<2x64xf32>
    %157 = arith.addf %155, %156 : vector<2x64xf32>
    %158 = arith.addf %157, %123 : vector<2x64xf32>
    %159 = vector.extract_strided_slice %133 {offsets = [0, 0], sizes = [2, 32], strides = [1, 1]} : vector<2x46xf32> to vector<2x32xf32>
    %c0_37 = arith.constant 0 : index
    %c0_38 = arith.constant 0 : index
    %160 = vector.load %arg5[%c0_37, %c0_38] : memref<2x256xf32, #tpu.memory_space<vmem>>, vector<2x32xf32>
    tpu.vector_store %arg5[%c0_37, %c0_38], %159 {strides = array<i32>} : memref<2x256xf32, #tpu.memory_space<vmem>>, vector<2x32xf32>,
    %cst_39 = arith.constant dense<0.000000e+00> : vector<2x46xf32>
    %161 = tpu.matmul %159, %0, %cst_39 {dimension_numbers = #tpu.dot_dimension_numbers<[1], [0], [0], [1], [0, 0, 1, 1], [], []>} : vector<2x32xf32>, vector<32x46xf32>, vector<2x46xf32> -> vector<2x46xf32>
    %cst_40 = arith.constant dense<0.000000e+00> : vector<2x46xf32>
    %162 = tpu.matmul %158, %1, %cst_40 {dimension_numbers = #tpu.dot_dimension_numbers<[1], [0], [0], [1], [0, 0, 1, 1], [], []>} : vector<2x64xf32>, vector<64x46xf32>, vector<2x46xf32> -> vector<2x46xf32>
    %163 = arith.addf %161, %162 : vector<2x46xf32>
    %c1 = arith.constant 1 : index
    %c0_41 = arith.constant 0 : index
    %c0_42 = arith.constant 0 : index
    %164 = vector.load %arg1[%c1, %c0_41, %c0_42] : memref<8x2x46xf32, #tpu.memory_space<vmem>>, vector<1x2x46xf32>
    %165 = vector.shape_cast %164 : vector<1x2x46xf32> to vector<2x46xf32>
    %166 = arith.addf %163, %165 : vector<2x46xf32>
    %167 = math.tanh %166 : vector<2x46xf32>
    %168 = vector.extract_strided_slice %166 {offsets = [0, 32], sizes = [2, 6], strides = [1, 1]} : vector<2x46xf32> to vector<2x6xf32>
    %169 = vector.extract_strided_slice %167 {offsets = [0, 38], sizes = [2, 8], strides = [1, 1]} : vector<2x46xf32> to vector<2x8xf32>
    %cst_43 = arith.constant dense<0.000000e+00> : vector<2x64xf32>
    %170 = tpu.matmul %169, %119, %cst_43 {dimension_numbers = #tpu.dot_dimension_numbers<[1], [0], [0], [1], [0, 0, 1, 1], [], []>} : vector<2x8xf32>, vector<8x64xf32>, vector<2x64xf32> -> vector<2x64xf32>
    %cst_44 = arith.constant dense<0xFF800000> : vector<2xf32>
    %171 = vector.multi_reduction <maximumf>, %168, %cst_44 [1] : vector<2x6xf32> to vector<2xf32>
    %172 = vector.shape_cast %171 : vector<2xf32> to vector<2x1xf32>
    %173 = vector.broadcast %172 : vector<2x1xf32> to vector<2x6xf32>
    %174 = arith.subf %168, %173 : vector<2x6xf32>
    %175 = math.exp %174 : vector<2x6xf32>
    %cst_45 = arith.constant dense<0.000000e+00> : vector<2x6xf32>
    %176 = tpu.matmul %175, %96, %cst_45 {dimension_numbers = #tpu.dot_dimension_numbers<[1], [0], [0], [1], [0, 0, 1, 1], [], []>} : vector<2x6xf32>, vector<6x6xf32>, vector<2x6xf32> -> vector<2x6xf32>
    %177 = tpu.reciprocal %176 {approx = true} : vector<2x6xf32> -> vector<2x6xf32>
    %178 = arith.mulf %175, %177 : vector<2x6xf32>
    %cst_46 = arith.constant dense<0.000000e+00> : vector<2x64xf32>
    %179 = tpu.matmul %178, %51, %cst_46 {dimension_numbers = #tpu.dot_dimension_numbers<[1], [0], [0], [1], [0, 0, 1, 1], [], []>} : vector<2x6xf32>, vector<6x64xf32>, vector<2x64xf32> -> vector<2x64xf32>
    %cst_47 = arith.constant dense<0.000000e+00> : vector<2x64xf32>
    %180 = tpu.matmul %178, %60, %cst_47 {dimension_numbers = #tpu.dot_dimension_numbers<[1], [0], [0], [1], [0, 0, 1, 1], [], []>} : vector<2x6xf32>, vector<6x64xf32>, vector<2x64xf32> -> vector<2x64xf32>
    %cst_48 = arith.constant dense<0.000000e+00> : vector<2x64xf32>
    %181 = tpu.matmul %178, %69, %cst_48 {dimension_numbers = #tpu.dot_dimension_numbers<[1], [0], [0], [1], [0, 0, 1, 1], [], []>} : vector<2x6xf32>, vector<6x64xf32>, vector<2x64xf32> -> vector<2x64xf32>
    %c4_i32_49 = arith.constant 4 : i32
    %182 = tpu.dynamic_rotate %158 by %c4_i32_49 dim 1 : vector<2x64xf32>, i32 -> vector<2x64xf32>
    %c60_i32_50 = arith.constant 60 : i32
    %183 = tpu.dynamic_rotate %158 by %c60_i32_50 dim 1 : vector<2x64xf32>, i32 -> vector<2x64xf32>
    %184 = arith.mulf %179, %182 : vector<2x64xf32>
    %185 = arith.mulf %180, %183 : vector<2x64xf32>
    %186 = arith.addf %184, %185 : vector<2x64xf32>
    %187 = arith.mulf %181, %158 : vector<2x64xf32>
    %188 = arith.addf %186, %187 : vector<2x64xf32>
    %189 = arith.mulf %121, %188 : vector<2x64xf32>
    %190 = arith.mulf %179, %170 : vector<2x64xf32>
    %191 = arith.addf %189, %190 : vector<2x64xf32>
    %192 = arith.addf %191, %123 : vector<2x64xf32>
    %193 = vector.extract_strided_slice %167 {offsets = [0, 0], sizes = [2, 32], strides = [1, 1]} : vector<2x46xf32> to vector<2x32xf32>
    %c0_51 = arith.constant 0 : index
    %c32 = arith.constant 32 : index
    %194 = vector.load %arg5[%c0_51, %c32] : memref<2x256xf32, #tpu.memory_space<vmem>>, vector<2x32xf32>
    tpu.vector_store %arg5[%c0_51, %c32], %193 {strides = array<i32>} : memref<2x256xf32, #tpu.memory_space<vmem>>, vector<2x32xf32>,
    %cst_52 = arith.constant dense<0.000000e+00> : vector<2x46xf32>
    %195 = tpu.matmul %193, %0, %cst_52 {dimension_numbers = #tpu.dot_dimension_numbers<[1], [0], [0], [1], [0, 0, 1, 1], [], []>} : vector<2x32xf32>, vector<32x46xf32>, vector<2x46xf32> -> vector<2x46xf32>
    %cst_53 = arith.constant dense<0.000000e+00> : vector<2x46xf32>
    %196 = tpu.matmul %192, %1, %cst_53 {dimension_numbers = #tpu.dot_dimension_numbers<[1], [0], [0], [1], [0, 0, 1, 1], [], []>} : vector<2x64xf32>, vector<64x46xf32>, vector<2x46xf32> -> vector<2x46xf32>
    %197 = arith.addf %195, %196 : vector<2x46xf32>
    %c2 = arith.constant 2 : index
    %c0_54 = arith.constant 0 : index
    %c0_55 = arith.constant 0 : index
    %198 = vector.load %arg1[%c2, %c0_54, %c0_55] : memref<8x2x46xf32, #tpu.memory_space<vmem>>, vector<1x2x46xf32>
    %199 = vector.shape_cast %198 : vector<1x2x46xf32> to vector<2x46xf32>
    %200 = arith.addf %197, %199 : vector<2x46xf32>
    %201 = math.tanh %200 : vector<2x46xf32>
    %202 = vector.extract_strided_slice %200 {offsets = [0, 32], sizes = [2, 6], strides = [1, 1]} : vector<2x46xf32> to vector<2x6xf32>
    %203 = vector.extract_strided_slice %201 {offsets = [0, 38], sizes = [2, 8], strides = [1, 1]} : vector<2x46xf32> to vector<2x8xf32>
    %cst_56 = arith.constant dense<0.000000e+00> : vector<2x64xf32>
    %204 = tpu.matmul %203, %119, %cst_56 {dimension_numbers = #tpu.dot_dimension_numbers<[1], [0], [0], [1], [0, 0, 1, 1], [], []>} : vector<2x8xf32>, vector<8x64xf32>, vector<2x64xf32> -> vector<2x64xf32>
    %cst_57 = arith.constant dense<0xFF800000> : vector<2xf32>
    %205 = vector.multi_reduction <maximumf>, %202, %cst_57 [1] : vector<2x6xf32> to vector<2xf32>
    %206 = vector.shape_cast %205 : vector<2xf32> to vector<2x1xf32>
    %207 = vector.broadcast %206 : vector<2x1xf32> to vector<2x6xf32>
    %208 = arith.subf %202, %207 : vector<2x6xf32>
    %209 = math.exp %208 : vector<2x6xf32>
    %cst_58 = arith.constant dense<0.000000e+00> : vector<2x6xf32>
    %210 = tpu.matmul %209, %96, %cst_58 {dimension_numbers = #tpu.dot_dimension_numbers<[1], [0], [0], [1], [0, 0, 1, 1], [], []>} : vector<2x6xf32>, vector<6x6xf32>, vector<2x6xf32> -> vector<2x6xf32>
    %211 = tpu.reciprocal %210 {approx = true} : vector<2x6xf32> -> vector<2x6xf32>
    %212 = arith.mulf %209, %211 : vector<2x6xf32>
    %cst_59 = arith.constant dense<0.000000e+00> : vector<2x64xf32>
    %213 = tpu.matmul %212, %51, %cst_59 {dimension_numbers = #tpu.dot_dimension_numbers<[1], [0], [0], [1], [0, 0, 1, 1], [], []>} : vector<2x6xf32>, vector<6x64xf32>, vector<2x64xf32> -> vector<2x64xf32>
    %cst_60 = arith.constant dense<0.000000e+00> : vector<2x64xf32>
    %214 = tpu.matmul %212, %60, %cst_60 {dimension_numbers = #tpu.dot_dimension_numbers<[1], [0], [0], [1], [0, 0, 1, 1], [], []>} : vector<2x6xf32>, vector<6x64xf32>, vector<2x64xf32> -> vector<2x64xf32>
    %cst_61 = arith.constant dense<0.000000e+00> : vector<2x64xf32>
    %215 = tpu.matmul %212, %69, %cst_61 {dimension_numbers = #tpu.dot_dimension_numbers<[1], [0], [0], [1], [0, 0, 1, 1], [], []>} : vector<2x6xf32>, vector<6x64xf32>, vector<2x64xf32> -> vector<2x64xf32>
    %c4_i32_62 = arith.constant 4 : i32
    %216 = tpu.dynamic_rotate %192 by %c4_i32_62 dim 1 : vector<2x64xf32>, i32 -> vector<2x64xf32>
    %c60_i32_63 = arith.constant 60 : i32
    %217 = tpu.dynamic_rotate %192 by %c60_i32_63 dim 1 : vector<2x64xf32>, i32 -> vector<2x64xf32>
    %218 = arith.mulf %213, %216 : vector<2x64xf32>
    %219 = arith.mulf %214, %217 : vector<2x64xf32>
    %220 = arith.addf %218, %219 : vector<2x64xf32>
    %221 = arith.mulf %215, %192 : vector<2x64xf32>
    %222 = arith.addf %220, %221 : vector<2x64xf32>
    %223 = arith.mulf %121, %222 : vector<2x64xf32>
    %224 = arith.mulf %213, %204 : vector<2x64xf32>
    %225 = arith.addf %223, %224 : vector<2x64xf32>
    %226 = arith.addf %225, %123 : vector<2x64xf32>
    %227 = vector.extract_strided_slice %201 {offsets = [0, 0], sizes = [2, 32], strides = [1, 1]} : vector<2x46xf32> to vector<2x32xf32>
    %c0_64 = arith.constant 0 : index
    %c64 = arith.constant 64 : index
    %228 = vector.load %arg5[%c0_64, %c64] : memref<2x256xf32, #tpu.memory_space<vmem>>, vector<2x32xf32>
    tpu.vector_store %arg5[%c0_64, %c64], %227 {strides = array<i32>} : memref<2x256xf32, #tpu.memory_space<vmem>>, vector<2x32xf32>,
    %cst_65 = arith.constant dense<0.000000e+00> : vector<2x46xf32>
    %229 = tpu.matmul %227, %0, %cst_65 {dimension_numbers = #tpu.dot_dimension_numbers<[1], [0], [0], [1], [0, 0, 1, 1], [], []>} : vector<2x32xf32>, vector<32x46xf32>, vector<2x46xf32> -> vector<2x46xf32>
    %cst_66 = arith.constant dense<0.000000e+00> : vector<2x46xf32>
    %230 = tpu.matmul %226, %1, %cst_66 {dimension_numbers = #tpu.dot_dimension_numbers<[1], [0], [0], [1], [0, 0, 1, 1], [], []>} : vector<2x64xf32>, vector<64x46xf32>, vector<2x46xf32> -> vector<2x46xf32>
    %231 = arith.addf %229, %230 : vector<2x46xf32>
    %c3 = arith.constant 3 : index
    %c0_67 = arith.constant 0 : index
    %c0_68 = arith.constant 0 : index
    %232 = vector.load %arg1[%c3, %c0_67, %c0_68] : memref<8x2x46xf32, #tpu.memory_space<vmem>>, vector<1x2x46xf32>
    %233 = vector.shape_cast %232 : vector<1x2x46xf32> to vector<2x46xf32>
    %234 = arith.addf %231, %233 : vector<2x46xf32>
    %235 = math.tanh %234 : vector<2x46xf32>
    %236 = vector.extract_strided_slice %234 {offsets = [0, 32], sizes = [2, 6], strides = [1, 1]} : vector<2x46xf32> to vector<2x6xf32>
    %237 = vector.extract_strided_slice %235 {offsets = [0, 38], sizes = [2, 8], strides = [1, 1]} : vector<2x46xf32> to vector<2x8xf32>
    %cst_69 = arith.constant dense<0.000000e+00> : vector<2x64xf32>
    %238 = tpu.matmul %237, %119, %cst_69 {dimension_numbers = #tpu.dot_dimension_numbers<[1], [0], [0], [1], [0, 0, 1, 1], [], []>} : vector<2x8xf32>, vector<8x64xf32>, vector<2x64xf32> -> vector<2x64xf32>
    %cst_70 = arith.constant dense<0xFF800000> : vector<2xf32>
    %239 = vector.multi_reduction <maximumf>, %236, %cst_70 [1] : vector<2x6xf32> to vector<2xf32>
    %240 = vector.shape_cast %239 : vector<2xf32> to vector<2x1xf32>
    %241 = vector.broadcast %240 : vector<2x1xf32> to vector<2x6xf32>
    %242 = arith.subf %236, %241 : vector<2x6xf32>
    %243 = math.exp %242 : vector<2x6xf32>
    %cst_71 = arith.constant dense<0.000000e+00> : vector<2x6xf32>
    %244 = tpu.matmul %243, %96, %cst_71 {dimension_numbers = #tpu.dot_dimension_numbers<[1], [0], [0], [1], [0, 0, 1, 1], [], []>} : vector<2x6xf32>, vector<6x6xf32>, vector<2x6xf32> -> vector<2x6xf32>
    %245 = tpu.reciprocal %244 {approx = true} : vector<2x6xf32> -> vector<2x6xf32>
    %246 = arith.mulf %243, %245 : vector<2x6xf32>
    %cst_72 = arith.constant dense<0.000000e+00> : vector<2x64xf32>
    %247 = tpu.matmul %246, %51, %cst_72 {dimension_numbers = #tpu.dot_dimension_numbers<[1], [0], [0], [1], [0, 0, 1, 1], [], []>} : vector<2x6xf32>, vector<6x64xf32>, vector<2x64xf32> -> vector<2x64xf32>
    %cst_73 = arith.constant dense<0.000000e+00> : vector<2x64xf32>
    %248 = tpu.matmul %246, %60, %cst_73 {dimension_numbers = #tpu.dot_dimension_numbers<[1], [0], [0], [1], [0, 0, 1, 1], [], []>} : vector<2x6xf32>, vector<6x64xf32>, vector<2x64xf32> -> vector<2x64xf32>
    %cst_74 = arith.constant dense<0.000000e+00> : vector<2x64xf32>
    %249 = tpu.matmul %246, %69, %cst_74 {dimension_numbers = #tpu.dot_dimension_numbers<[1], [0], [0], [1], [0, 0, 1, 1], [], []>} : vector<2x6xf32>, vector<6x64xf32>, vector<2x64xf32> -> vector<2x64xf32>
    %c4_i32_75 = arith.constant 4 : i32
    %250 = tpu.dynamic_rotate %226 by %c4_i32_75 dim 1 : vector<2x64xf32>, i32 -> vector<2x64xf32>
    %c60_i32_76 = arith.constant 60 : i32
    %251 = tpu.dynamic_rotate %226 by %c60_i32_76 dim 1 : vector<2x64xf32>, i32 -> vector<2x64xf32>
    %252 = arith.mulf %247, %250 : vector<2x64xf32>
    %253 = arith.mulf %248, %251 : vector<2x64xf32>
    %254 = arith.addf %252, %253 : vector<2x64xf32>
    %255 = arith.mulf %249, %226 : vector<2x64xf32>
    %256 = arith.addf %254, %255 : vector<2x64xf32>
    %257 = arith.mulf %121, %256 : vector<2x64xf32>
    %258 = arith.mulf %247, %238 : vector<2x64xf32>
    %259 = arith.addf %257, %258 : vector<2x64xf32>
    %260 = arith.addf %259, %123 : vector<2x64xf32>
    %261 = vector.extract_strided_slice %235 {offsets = [0, 0], sizes = [2, 32], strides = [1, 1]} : vector<2x46xf32> to vector<2x32xf32>
    %c0_77 = arith.constant 0 : index
    %c96 = arith.constant 96 : index
    %262 = vector.load %arg5[%c0_77, %c96] : memref<2x256xf32, #tpu.memory_space<vmem>>, vector<2x32xf32>
    tpu.vector_store %arg5[%c0_77, %c96], %261 {strides = array<i32>} : memref<2x256xf32, #tpu.memory_space<vmem>>, vector<2x32xf32>,
    %cst_78 = arith.constant dense<0.000000e+00> : vector<2x46xf32>
    %263 = tpu.matmul %261, %0, %cst_78 {dimension_numbers = #tpu.dot_dimension_numbers<[1], [0], [0], [1], [0, 0, 1, 1], [], []>} : vector<2x32xf32>, vector<32x46xf32>, vector<2x46xf32> -> vector<2x46xf32>
    %cst_79 = arith.constant dense<0.000000e+00> : vector<2x46xf32>
    %264 = tpu.matmul %260, %1, %cst_79 {dimension_numbers = #tpu.dot_dimension_numbers<[1], [0], [0], [1], [0, 0, 1, 1], [], []>} : vector<2x64xf32>, vector<64x46xf32>, vector<2x46xf32> -> vector<2x46xf32>
    %265 = arith.addf %263, %264 : vector<2x46xf32>
    %c4 = arith.constant 4 : index
    %c0_80 = arith.constant 0 : index
    %c0_81 = arith.constant 0 : index
    %266 = vector.load %arg1[%c4, %c0_80, %c0_81] : memref<8x2x46xf32, #tpu.memory_space<vmem>>, vector<1x2x46xf32>
    %267 = vector.shape_cast %266 : vector<1x2x46xf32> to vector<2x46xf32>
    %268 = arith.addf %265, %267 : vector<2x46xf32>
    %269 = math.tanh %268 : vector<2x46xf32>
    %270 = vector.extract_strided_slice %268 {offsets = [0, 32], sizes = [2, 6], strides = [1, 1]} : vector<2x46xf32> to vector<2x6xf32>
    %271 = vector.extract_strided_slice %269 {offsets = [0, 38], sizes = [2, 8], strides = [1, 1]} : vector<2x46xf32> to vector<2x8xf32>
    %cst_82 = arith.constant dense<0.000000e+00> : vector<2x64xf32>
    %272 = tpu.matmul %271, %119, %cst_82 {dimension_numbers = #tpu.dot_dimension_numbers<[1], [0], [0], [1], [0, 0, 1, 1], [], []>} : vector<2x8xf32>, vector<8x64xf32>, vector<2x64xf32> -> vector<2x64xf32>
    %cst_83 = arith.constant dense<0xFF800000> : vector<2xf32>
    %273 = vector.multi_reduction <maximumf>, %270, %cst_83 [1] : vector<2x6xf32> to vector<2xf32>
    %274 = vector.shape_cast %273 : vector<2xf32> to vector<2x1xf32>
    %275 = vector.broadcast %274 : vector<2x1xf32> to vector<2x6xf32>
    %276 = arith.subf %270, %275 : vector<2x6xf32>
    %277 = math.exp %276 : vector<2x6xf32>
    %cst_84 = arith.constant dense<0.000000e+00> : vector<2x6xf32>
    %278 = tpu.matmul %277, %96, %cst_84 {dimension_numbers = #tpu.dot_dimension_numbers<[1], [0], [0], [1], [0, 0, 1, 1], [], []>} : vector<2x6xf32>, vector<6x6xf32>, vector<2x6xf32> -> vector<2x6xf32>
    %279 = tpu.reciprocal %278 {approx = true} : vector<2x6xf32> -> vector<2x6xf32>
    %280 = arith.mulf %277, %279 : vector<2x6xf32>
    %cst_85 = arith.constant dense<0.000000e+00> : vector<2x64xf32>
    %281 = tpu.matmul %280, %51, %cst_85 {dimension_numbers = #tpu.dot_dimension_numbers<[1], [0], [0], [1], [0, 0, 1, 1], [], []>} : vector<2x6xf32>, vector<6x64xf32>, vector<2x64xf32> -> vector<2x64xf32>
    %cst_86 = arith.constant dense<0.000000e+00> : vector<2x64xf32>
    %282 = tpu.matmul %280, %60, %cst_86 {dimension_numbers = #tpu.dot_dimension_numbers<[1], [0], [0], [1], [0, 0, 1, 1], [], []>} : vector<2x6xf32>, vector<6x64xf32>, vector<2x64xf32> -> vector<2x64xf32>
    %cst_87 = arith.constant dense<0.000000e+00> : vector<2x64xf32>
    %283 = tpu.matmul %280, %69, %cst_87 {dimension_numbers = #tpu.dot_dimension_numbers<[1], [0], [0], [1], [0, 0, 1, 1], [], []>} : vector<2x6xf32>, vector<6x64xf32>, vector<2x64xf32> -> vector<2x64xf32>
    %c4_i32_88 = arith.constant 4 : i32
    %284 = tpu.dynamic_rotate %260 by %c4_i32_88 dim 1 : vector<2x64xf32>, i32 -> vector<2x64xf32>
    %c60_i32_89 = arith.constant 60 : i32
    %285 = tpu.dynamic_rotate %260 by %c60_i32_89 dim 1 : vector<2x64xf32>, i32 -> vector<2x64xf32>
    %286 = arith.mulf %281, %284 : vector<2x64xf32>
    %287 = arith.mulf %282, %285 : vector<2x64xf32>
    %288 = arith.addf %286, %287 : vector<2x64xf32>
    %289 = arith.mulf %283, %260 : vector<2x64xf32>
    %290 = arith.addf %288, %289 : vector<2x64xf32>
    %291 = arith.mulf %121, %290 : vector<2x64xf32>
    %292 = arith.mulf %281, %272 : vector<2x64xf32>
    %293 = arith.addf %291, %292 : vector<2x64xf32>
    %294 = arith.addf %293, %123 : vector<2x64xf32>
    %295 = vector.extract_strided_slice %269 {offsets = [0, 0], sizes = [2, 32], strides = [1, 1]} : vector<2x46xf32> to vector<2x32xf32>
    %c0_90 = arith.constant 0 : index
    %c128 = arith.constant 128 : index
    %296 = vector.load %arg5[%c0_90, %c128] : memref<2x256xf32, #tpu.memory_space<vmem>>, vector<2x32xf32>
    tpu.vector_store %arg5[%c0_90, %c128], %295 {strides = array<i32>} : memref<2x256xf32, #tpu.memory_space<vmem>>, vector<2x32xf32>,
    %cst_91 = arith.constant dense<0.000000e+00> : vector<2x46xf32>
    %297 = tpu.matmul %295, %0, %cst_91 {dimension_numbers = #tpu.dot_dimension_numbers<[1], [0], [0], [1], [0, 0, 1, 1], [], []>} : vector<2x32xf32>, vector<32x46xf32>, vector<2x46xf32> -> vector<2x46xf32>
    %cst_92 = arith.constant dense<0.000000e+00> : vector<2x46xf32>
    %298 = tpu.matmul %294, %1, %cst_92 {dimension_numbers = #tpu.dot_dimension_numbers<[1], [0], [0], [1], [0, 0, 1, 1], [], []>} : vector<2x64xf32>, vector<64x46xf32>, vector<2x46xf32> -> vector<2x46xf32>
    %299 = arith.addf %297, %298 : vector<2x46xf32>
    %c5 = arith.constant 5 : index
    %c0_93 = arith.constant 0 : index
    %c0_94 = arith.constant 0 : index
    %300 = vector.load %arg1[%c5, %c0_93, %c0_94] : memref<8x2x46xf32, #tpu.memory_space<vmem>>, vector<1x2x46xf32>
    %301 = vector.shape_cast %300 : vector<1x2x46xf32> to vector<2x46xf32>
    %302 = arith.addf %299, %301 : vector<2x46xf32>
    %303 = math.tanh %302 : vector<2x46xf32>
    %304 = vector.extract_strided_slice %302 {offsets = [0, 32], sizes = [2, 6], strides = [1, 1]} : vector<2x46xf32> to vector<2x6xf32>
    %305 = vector.extract_strided_slice %303 {offsets = [0, 38], sizes = [2, 8], strides = [1, 1]} : vector<2x46xf32> to vector<2x8xf32>
    %cst_95 = arith.constant dense<0.000000e+00> : vector<2x64xf32>
    %306 = tpu.matmul %305, %119, %cst_95 {dimension_numbers = #tpu.dot_dimension_numbers<[1], [0], [0], [1], [0, 0, 1, 1], [], []>} : vector<2x8xf32>, vector<8x64xf32>, vector<2x64xf32> -> vector<2x64xf32>
    %cst_96 = arith.constant dense<0xFF800000> : vector<2xf32>
    %307 = vector.multi_reduction <maximumf>, %304, %cst_96 [1] : vector<2x6xf32> to vector<2xf32>
    %308 = vector.shape_cast %307 : vector<2xf32> to vector<2x1xf32>
    %309 = vector.broadcast %308 : vector<2x1xf32> to vector<2x6xf32>
    %310 = arith.subf %304, %309 : vector<2x6xf32>
    %311 = math.exp %310 : vector<2x6xf32>
    %cst_97 = arith.constant dense<0.000000e+00> : vector<2x6xf32>
    %312 = tpu.matmul %311, %96, %cst_97 {dimension_numbers = #tpu.dot_dimension_numbers<[1], [0], [0], [1], [0, 0, 1, 1], [], []>} : vector<2x6xf32>, vector<6x6xf32>, vector<2x6xf32> -> vector<2x6xf32>
    %313 = tpu.reciprocal %312 {approx = true} : vector<2x6xf32> -> vector<2x6xf32>
    %314 = arith.mulf %311, %313 : vector<2x6xf32>
    %cst_98 = arith.constant dense<0.000000e+00> : vector<2x64xf32>
    %315 = tpu.matmul %314, %51, %cst_98 {dimension_numbers = #tpu.dot_dimension_numbers<[1], [0], [0], [1], [0, 0, 1, 1], [], []>} : vector<2x6xf32>, vector<6x64xf32>, vector<2x64xf32> -> vector<2x64xf32>
    %cst_99 = arith.constant dense<0.000000e+00> : vector<2x64xf32>
    %316 = tpu.matmul %314, %60, %cst_99 {dimension_numbers = #tpu.dot_dimension_numbers<[1], [0], [0], [1], [0, 0, 1, 1], [], []>} : vector<2x6xf32>, vector<6x64xf32>, vector<2x64xf32> -> vector<2x64xf32>
    %cst_100 = arith.constant dense<0.000000e+00> : vector<2x64xf32>
    %317 = tpu.matmul %314, %69, %cst_100 {dimension_numbers = #tpu.dot_dimension_numbers<[1], [0], [0], [1], [0, 0, 1, 1], [], []>} : vector<2x6xf32>, vector<6x64xf32>, vector<2x64xf32> -> vector<2x64xf32>
    %c4_i32_101 = arith.constant 4 : i32
    %318 = tpu.dynamic_rotate %294 by %c4_i32_101 dim 1 : vector<2x64xf32>, i32 -> vector<2x64xf32>
    %c60_i32_102 = arith.constant 60 : i32
    %319 = tpu.dynamic_rotate %294 by %c60_i32_102 dim 1 : vector<2x64xf32>, i32 -> vector<2x64xf32>
    %320 = arith.mulf %315, %318 : vector<2x64xf32>
    %321 = arith.mulf %316, %319 : vector<2x64xf32>
    %322 = arith.addf %320, %321 : vector<2x64xf32>
    %323 = arith.mulf %317, %294 : vector<2x64xf32>
    %324 = arith.addf %322, %323 : vector<2x64xf32>
    %325 = arith.mulf %121, %324 : vector<2x64xf32>
    %326 = arith.mulf %315, %306 : vector<2x64xf32>
    %327 = arith.addf %325, %326 : vector<2x64xf32>
    %328 = arith.addf %327, %123 : vector<2x64xf32>
    %329 = vector.extract_strided_slice %303 {offsets = [0, 0], sizes = [2, 32], strides = [1, 1]} : vector<2x46xf32> to vector<2x32xf32>
    %c0_103 = arith.constant 0 : index
    %c160 = arith.constant 160 : index
    %330 = vector.load %arg5[%c0_103, %c160] : memref<2x256xf32, #tpu.memory_space<vmem>>, vector<2x32xf32>
    tpu.vector_store %arg5[%c0_103, %c160], %329 {strides = array<i32>} : memref<2x256xf32, #tpu.memory_space<vmem>>, vector<2x32xf32>,
    %cst_104 = arith.constant dense<0.000000e+00> : vector<2x46xf32>
    %331 = tpu.matmul %329, %0, %cst_104 {dimension_numbers = #tpu.dot_dimension_numbers<[1], [0], [0], [1], [0, 0, 1, 1], [], []>} : vector<2x32xf32>, vector<32x46xf32>, vector<2x46xf32> -> vector<2x46xf32>
    %cst_105 = arith.constant dense<0.000000e+00> : vector<2x46xf32>
    %332 = tpu.matmul %328, %1, %cst_105 {dimension_numbers = #tpu.dot_dimension_numbers<[1], [0], [0], [1], [0, 0, 1, 1], [], []>} : vector<2x64xf32>, vector<64x46xf32>, vector<2x46xf32> -> vector<2x46xf32>
    %333 = arith.addf %331, %332 : vector<2x46xf32>
    %c6 = arith.constant 6 : index
    %c0_106 = arith.constant 0 : index
    %c0_107 = arith.constant 0 : index
    %334 = vector.load %arg1[%c6, %c0_106, %c0_107] : memref<8x2x46xf32, #tpu.memory_space<vmem>>, vector<1x2x46xf32>
    %335 = vector.shape_cast %334 : vector<1x2x46xf32> to vector<2x46xf32>
    %336 = arith.addf %333, %335 : vector<2x46xf32>
    %337 = math.tanh %336 : vector<2x46xf32>
    %338 = vector.extract_strided_slice %336 {offsets = [0, 32], sizes = [2, 6], strides = [1, 1]} : vector<2x46xf32> to vector<2x6xf32>
    %339 = vector.extract_strided_slice %337 {offsets = [0, 38], sizes = [2, 8], strides = [1, 1]} : vector<2x46xf32> to vector<2x8xf32>
    %cst_108 = arith.constant dense<0.000000e+00> : vector<2x64xf32>
    %340 = tpu.matmul %339, %119, %cst_108 {dimension_numbers = #tpu.dot_dimension_numbers<[1], [0], [0], [1], [0, 0, 1, 1], [], []>} : vector<2x8xf32>, vector<8x64xf32>, vector<2x64xf32> -> vector<2x64xf32>
    %cst_109 = arith.constant dense<0xFF800000> : vector<2xf32>
    %341 = vector.multi_reduction <maximumf>, %338, %cst_109 [1] : vector<2x6xf32> to vector<2xf32>
    %342 = vector.shape_cast %341 : vector<2xf32> to vector<2x1xf32>
    %343 = vector.broadcast %342 : vector<2x1xf32> to vector<2x6xf32>
    %344 = arith.subf %338, %343 : vector<2x6xf32>
    %345 = math.exp %344 : vector<2x6xf32>
    %cst_110 = arith.constant dense<0.000000e+00> : vector<2x6xf32>
    %346 = tpu.matmul %345, %96, %cst_110 {dimension_numbers = #tpu.dot_dimension_numbers<[1], [0], [0], [1], [0, 0, 1, 1], [], []>} : vector<2x6xf32>, vector<6x6xf32>, vector<2x6xf32> -> vector<2x6xf32>
    %347 = tpu.reciprocal %346 {approx = true} : vector<2x6xf32> -> vector<2x6xf32>
    %348 = arith.mulf %345, %347 : vector<2x6xf32>
    %cst_111 = arith.constant dense<0.000000e+00> : vector<2x64xf32>
    %349 = tpu.matmul %348, %51, %cst_111 {dimension_numbers = #tpu.dot_dimension_numbers<[1], [0], [0], [1], [0, 0, 1, 1], [], []>} : vector<2x6xf32>, vector<6x64xf32>, vector<2x64xf32> -> vector<2x64xf32>
    %cst_112 = arith.constant dense<0.000000e+00> : vector<2x64xf32>
    %350 = tpu.matmul %348, %60, %cst_112 {dimension_numbers = #tpu.dot_dimension_numbers<[1], [0], [0], [1], [0, 0, 1, 1], [], []>} : vector<2x6xf32>, vector<6x64xf32>, vector<2x64xf32> -> vector<2x64xf32>
    %cst_113 = arith.constant dense<0.000000e+00> : vector<2x64xf32>
    %351 = tpu.matmul %348, %69, %cst_113 {dimension_numbers = #tpu.dot_dimension_numbers<[1], [0], [0], [1], [0, 0, 1, 1], [], []>} : vector<2x6xf32>, vector<6x64xf32>, vector<2x64xf32> -> vector<2x64xf32>
    %c4_i32_114 = arith.constant 4 : i32
    %352 = tpu.dynamic_rotate %328 by %c4_i32_114 dim 1 : vector<2x64xf32>, i32 -> vector<2x64xf32>
    %c60_i32_115 = arith.constant 60 : i32
    %353 = tpu.dynamic_rotate %328 by %c60_i32_115 dim 1 : vector<2x64xf32>, i32 -> vector<2x64xf32>
    %354 = arith.mulf %349, %352 : vector<2x64xf32>
    %355 = arith.mulf %350, %353 : vector<2x64xf32>
    %356 = arith.addf %354, %355 : vector<2x64xf32>
    %357 = arith.mulf %351, %328 : vector<2x64xf32>
    %358 = arith.addf %356, %357 : vector<2x64xf32>
    %359 = arith.mulf %121, %358 : vector<2x64xf32>
    %360 = arith.mulf %349, %340 : vector<2x64xf32>
    %361 = arith.addf %359, %360 : vector<2x64xf32>
    %362 = arith.addf %361, %123 : vector<2x64xf32>
    %363 = vector.extract_strided_slice %337 {offsets = [0, 0], sizes = [2, 32], strides = [1, 1]} : vector<2x46xf32> to vector<2x32xf32>
    %c0_116 = arith.constant 0 : index
    %c192 = arith.constant 192 : index
    %364 = vector.load %arg5[%c0_116, %c192] : memref<2x256xf32, #tpu.memory_space<vmem>>, vector<2x32xf32>
    tpu.vector_store %arg5[%c0_116, %c192], %363 {strides = array<i32>} : memref<2x256xf32, #tpu.memory_space<vmem>>, vector<2x32xf32>,
    %cst_117 = arith.constant dense<0.000000e+00> : vector<2x46xf32>
    %365 = tpu.matmul %363, %0, %cst_117 {dimension_numbers = #tpu.dot_dimension_numbers<[1], [0], [0], [1], [0, 0, 1, 1], [], []>} : vector<2x32xf32>, vector<32x46xf32>, vector<2x46xf32> -> vector<2x46xf32>
    %cst_118 = arith.constant dense<0.000000e+00> : vector<2x46xf32>
    %366 = tpu.matmul %362, %1, %cst_118 {dimension_numbers = #tpu.dot_dimension_numbers<[1], [0], [0], [1], [0, 0, 1, 1], [], []>} : vector<2x64xf32>, vector<64x46xf32>, vector<2x46xf32> -> vector<2x46xf32>
    %367 = arith.addf %365, %366 : vector<2x46xf32>
    %c7 = arith.constant 7 : index
    %c0_119 = arith.constant 0 : index
    %c0_120 = arith.constant 0 : index
    %368 = vector.load %arg1[%c7, %c0_119, %c0_120] : memref<8x2x46xf32, #tpu.memory_space<vmem>>, vector<1x2x46xf32>
    %369 = vector.shape_cast %368 : vector<1x2x46xf32> to vector<2x46xf32>
    %370 = arith.addf %367, %369 : vector<2x46xf32>
    %371 = math.tanh %370 : vector<2x46xf32>
    %372 = vector.extract_strided_slice %370 {offsets = [0, 32], sizes = [2, 6], strides = [1, 1]} : vector<2x46xf32> to vector<2x6xf32>
    %373 = vector.extract_strided_slice %371 {offsets = [0, 38], sizes = [2, 8], strides = [1, 1]} : vector<2x46xf32> to vector<2x8xf32>
    %cst_121 = arith.constant dense<0.000000e+00> : vector<2x64xf32>
    %374 = tpu.matmul %373, %119, %cst_121 {dimension_numbers = #tpu.dot_dimension_numbers<[1], [0], [0], [1], [0, 0, 1, 1], [], []>} : vector<2x8xf32>, vector<8x64xf32>, vector<2x64xf32> -> vector<2x64xf32>
    %cst_122 = arith.constant dense<0xFF800000> : vector<2xf32>
    %375 = vector.multi_reduction <maximumf>, %372, %cst_122 [1] : vector<2x6xf32> to vector<2xf32>
    %376 = vector.shape_cast %375 : vector<2xf32> to vector<2x1xf32>
    %377 = vector.broadcast %376 : vector<2x1xf32> to vector<2x6xf32>
    %378 = arith.subf %372, %377 : vector<2x6xf32>
    %379 = math.exp %378 : vector<2x6xf32>
    %cst_123 = arith.constant dense<0.000000e+00> : vector<2x6xf32>
    %380 = tpu.matmul %379, %96, %cst_123 {dimension_numbers = #tpu.dot_dimension_numbers<[1], [0], [0], [1], [0, 0, 1, 1], [], []>} : vector<2x6xf32>, vector<6x6xf32>, vector<2x6xf32> -> vector<2x6xf32>
    %381 = tpu.reciprocal %380 {approx = true} : vector<2x6xf32> -> vector<2x6xf32>
    %382 = arith.mulf %379, %381 : vector<2x6xf32>
    %cst_124 = arith.constant dense<0.000000e+00> : vector<2x64xf32>
    %383 = tpu.matmul %382, %51, %cst_124 {dimension_numbers = #tpu.dot_dimension_numbers<[1], [0], [0], [1], [0, 0, 1, 1], [], []>} : vector<2x6xf32>, vector<6x64xf32>, vector<2x64xf32> -> vector<2x64xf32>
    %cst_125 = arith.constant dense<0.000000e+00> : vector<2x64xf32>
    %384 = tpu.matmul %382, %60, %cst_125 {dimension_numbers = #tpu.dot_dimension_numbers<[1], [0], [0], [1], [0, 0, 1, 1], [], []>} : vector<2x6xf32>, vector<6x64xf32>, vector<2x64xf32> -> vector<2x64xf32>
    %cst_126 = arith.constant dense<0.000000e+00> : vector<2x64xf32>
    %385 = tpu.matmul %382, %69, %cst_126 {dimension_numbers = #tpu.dot_dimension_numbers<[1], [0], [0], [1], [0, 0, 1, 1], [], []>} : vector<2x6xf32>, vector<6x64xf32>, vector<2x64xf32> -> vector<2x64xf32>
    %c4_i32_127 = arith.constant 4 : i32
    %386 = tpu.dynamic_rotate %362 by %c4_i32_127 dim 1 : vector<2x64xf32>, i32 -> vector<2x64xf32>
    %c60_i32_128 = arith.constant 60 : i32
    %387 = tpu.dynamic_rotate %362 by %c60_i32_128 dim 1 : vector<2x64xf32>, i32 -> vector<2x64xf32>
    %388 = arith.mulf %383, %386 : vector<2x64xf32>
    %389 = arith.mulf %384, %387 : vector<2x64xf32>
    %390 = arith.addf %388, %389 : vector<2x64xf32>
    %391 = arith.mulf %385, %362 : vector<2x64xf32>
    %392 = arith.addf %390, %391 : vector<2x64xf32>
    %393 = arith.mulf %121, %392 : vector<2x64xf32>
    %394 = arith.mulf %383, %374 : vector<2x64xf32>
    %395 = arith.addf %393, %394 : vector<2x64xf32>
    %396 = arith.addf %395, %123 : vector<2x64xf32>
    %397 = vector.extract_strided_slice %371 {offsets = [0, 0], sizes = [2, 32], strides = [1, 1]} : vector<2x46xf32> to vector<2x32xf32>
    %c0_129 = arith.constant 0 : index
    %c224 = arith.constant 224 : index
    %398 = vector.load %arg5[%c0_129, %c224] : memref<2x256xf32, #tpu.memory_space<vmem>>, vector<2x32xf32>
    tpu.vector_store %arg5[%c0_129, %c224], %397 {strides = array<i32>} : memref<2x256xf32, #tpu.memory_space<vmem>>, vector<2x32xf32>,
    %c0_130 = arith.constant 0 : index
    %c0_131 = arith.constant 0 : index
    %399 = vector.load %arg6[%c0_130, %c0_131] : memref<2x32xf32, #tpu.memory_space<vmem>>, vector<2x32xf32>
    tpu.vector_store %arg6[%c0_130, %c0_131], %397 {strides = array<i32>} : memref<2x32xf32, #tpu.memory_space<vmem>>, vector<2x32xf32>,
    %c0_132 = arith.constant 0 : index
    %c0_133 = arith.constant 0 : index
    %400 = vector.load %arg7[%c0_132, %c0_133] : memref<2x64xf32, #tpu.memory_space<vmem>>, vector<2x64xf32>
    tpu.vector_store %arg7[%c0_132, %c0_133], %396 {strides = array<i32>} : memref<2x64xf32, #tpu.memory_space<vmem>>, vector<2x64xf32>,
    return
  }
  func.func @transform_0(%arg0: i32) -> (i32, i32, i32) {
    %c0_i32 = arith.constant 0 : i32
    %c0_i32_0 = arith.constant 0 : i32
    %c0_i32_1 = arith.constant 0 : i32
    %c0_i32_2 = arith.constant 0 : i32
    return %c0_i32, %c0_i32_0, %c0_i32_1 : i32, i32, i32
  }
  func.func @transform_1(%arg0: i32) -> (i32, i32) {
    %c0_i32 = arith.constant 0 : i32
    %c0_i32_0 = arith.constant 0 : i32
    %c0_i32_1 = arith.constant 0 : i32
    return %c0_i32, %c0_i32_0 : i32, i32
  }
  func.func @transform_2(%arg0: i32) -> (i32, i32) {
    %c0_i32 = arith.constant 0 : i32
    %c0_i32_0 = arith.constant 0 : i32
    %c0_i32_1 = arith.constant 0 : i32
    return %c0_i32, %c0_i32_0 : i32, i32
  }
  func.func @transform_3(%arg0: i32) -> (i32, i32) {
    %c0_i32 = arith.constant 0 : i32
    %c0_i32_0 = arith.constant 0 : i32
    %c0_i32_1 = arith.constant 0 : i32
    return %c0_i32, %c0_i32_0 : i32, i32
  }
  func.func @transform_4(%arg0: i32) -> (i32, i32) {
    %c0_i32 = arith.constant 0 : i32
    %c0_i32_0 = arith.constant 0 : i32
    %c0_i32_1 = arith.constant 0 : i32
    return %c0_i32, %c0_i32_0 : i32, i32
  }
  func.func @transform_5(%arg0: i32) -> (i32, i32) {
    %c0_i32 = arith.constant 0 : i32
    %c0_i32_0 = arith.constant 0 : i32
    %c0_i32_1 = arith.constant 0 : i32
    return %c0_i32, %c0_i32_0 : i32, i32
  }
  func.func @transform_6(%arg0: i32) -> (i32, i32) {
    %c0_i32 = arith.constant 0 : i32
    %c0_i32_0 = arith.constant 0 : i32
    %c0_i32_1 = arith.constant 0 : i32
    return %c0_i32, %c0_i32_0 : i32, i32
  }
}

</mosaic_0001>

<bundles_post_ra>
// kernel: tpu_custom_call.1
= control target key start
LH: loop header
LB: loop body
LE: loop exit
PB: predicated region body
PF: predicated region fallthrough
CT: control target
= control target key end

     0   :  { %12 = vsyncpa [#allocation3], 0  ;;  %v35_v1 = vlaneseq  ;;  %v5520_v2 = vmov 0.0   ;;  %vm5521_vm7 = vmmov 0   ;;  %s6524_s0 = inlined_call_operand.vmem [shape: f32[8,2,46], index: 0, kind: input, shape index: {}]   ;;  %s6525_s1 = inlined_call_operand.vmem [shape: f32[32,46], index: 1, kind: input, shape index: {}]   ;;  %s6526_s2 = inlined_call_operand.vmem [shape: f32[64,46], index: 2, kind: input, shape index: {}]   ;;  %s6527_s3 = inlined_call_operand.vmem [shape: f32[1,64], index: 3, kind: input, shape index: {}]   ;;  %s6528_s4 = inlined_call_operand.hbm [shape: f32[2,256], index: 4, kind: output, shape index: {0}]   ;;  %s6529_s5 = inlined_call_operand.hbm [shape: f32[2,32], index: 5, kind: output, shape index: {1}]   ;;  %s6530_s6 = inlined_call_operand.hbm [shape: f32[2,64], index: 6, kind: output, shape index: {2}]  }
   0x1   :  { %v5571_v0 = vld [vmem:[%s6526_s2 + $0x38] sm:$0xff]  ;;  %4943 = vmatprep.subr.mxu0 %v5520_v2  ;;  %v5577_v3 = vld [vmem:[%s6526_s2 + $0x30] sm:$0xff]  ;;  %4962 = vmatprep.subr.mxu1 %v5520_v2  ;;  %v5598_v7 = vld [vmem:[%s6526_s2 + $0x28] sm:$0xff] }
   0x2   :  { %v5583_v4 = vld [vmem:[%s6525_s1 + $0x18] sm:$0xff]  ;;  %4944 = vmatpush3.msra.mxu0 %v5571_v0  ;;  %v5590_v5 = vld [vmem:[%s6525_s1 + $0x10] sm:$0xff]  ;;  %v5592_v6 = vand.u32 127, %v35_v1  ;;  %v5604_v8 = vld [vmem:[%s6525_s1 + $0x8] sm:$0xff]  ;;  %v5626_v11 = vshrl.u32 %v35_v1, 7  ;;  %4970 = vmatprep.mubr.msk.f32.mxu1 %vm5521_vm7, %v5520_v2 }
   0x3   :  { %4963 = vmatpush3.msra.mxu1 %v5583_v4  ;;  %4945 = vmatprep.subr.mxu0 %v5520_v2  ;;  %v5615_v9 = vld [vmem:[%s6526_s2 + $0x20] sm:$0xff]  ;;  %v5636_v12 = vld [vmem:[%s6526_s2 + $0x18] sm:$0xff]  ;;  %v5649_v15 = vld [vmem:[%s6526_s2 + $0x10] sm:$0xff] }
   0x4   :  { %4964 = vmatprep.subr.mxu1 %v5520_v2  ;;  %4946 = vmatpush3.msra.mxu0 %v5577_v3  ;;  %vm46_vm0 = vcmp.ge.s32.totalorder %v5592_v6, 28  ;;  %vm47_vm1 = vcmp.lt.s32.totalorder %v5592_v6, 32  ;;  %vm49_vm2 = vcmp.ge.s32.totalorder %v5592_v6, 60  ;;  %v5621_v10 = vld [vmem:[%s6525_s1] sm:$0xff]  ;;  %vm50_vm4 = vcmp.lt.s32.totalorder %v5592_v6, 64 }
   0x5   :  { %4965 = vmatpush3.msra.mxu1 %v5590_v5  ;;  %4947 = vmatprep.subr.mxu0 %v5520_v2  ;;  %vm48_vm3 = vmand %vm46_vm0, %vm47_vm1  ;;  %v34_v13 = vld [vmem:[%s6527_s3] sm:$0x1]  ;;  %v115_v17 = vsub.s32 0, %v5626_v11 }
   0x6   :  { %4966 = vmatprep.subr.mxu1 %v5520_v2  ;;  %4948 = vmatpush3.msra.mxu0 %v5598_v7  ;;  %vm51_vm5 = vmand %vm49_vm2, %vm50_vm4 }
   0x7   :  { %4967 = vmatpush3.msra.mxu1 %v5604_v8  ;;  %4949 = vmatprep.subr.mxu0 %v5520_v2  ;;  %vm52_vm6 = vmor %vm48_vm3, %vm51_vm5 }
   0x8   :  { %4968 = vmatprep.subr.mxu1 %v5520_v2  ;;  %4950 = vmatpush3.msra.mxu0 %v5615_v9  ;;  %v4643_v14 = vsel %vm52_vm6, 1.0, %v5520_v2 }
   0x9   :  { %4969 = vmatpush3.msra.mxu1 %v5621_v10  ;;  %4951 = vmatprep.subr.mxu0 %v5520_v2  ;;  %v55_v16 = vmul.f32 %v4643_v14, %v34_v13 }
   0xa   :  { %13 = vsyncpa [#allocation5], 0  ;;  %4952 = vmatpush3.msra.mxu0 %v5636_v12  ;;  %4971 = vmatmul.mubr.f32.vlgmr.msra.gmra.mxu1 %v5520_v2  ;;  %v5660_v18 = vld [vmem:[%s6526_s2 + $0x8] sm:$0xff]  ;;  %v5672_v20 = vld [vmem:[%s6526_s2] sm:$0xff]  ;;  %v5674_v21 = vrot.slane %v34_v13, %v115_v17  ;;  %vm6533_vm8 = vcmask 523264   ;;  %vm6532_vm9 = vcmask 304384   ;;  %v101_v30 = vsub.s32 %v5592_v6, %v5626_v11 }
   0xb   :  { %4953 = vmatprep.subr.mxu0 %v5520_v2  ;;  %4959 = vmatprep.mubr.msk.f32.mxu0 %vm5521_vm7, %v5520_v2  ;;  %v5664_v19 = vrot.slane %v55_v16, %v115_v17  ;;  %v271_v25 = vld [vmem:[%s6524_s0] sm:$0x3]  ;;  %vm6531_vm10 = vcmask 254976   ;;  %vm99_vm11 = vcmp.lt.s32.totalorder %v5626_v11, 4  ;;  %vm104_vm13 = vcmp.ge.s32.totalorder %v5626_v11, 4  ;;  %s5523_s24 = smov 90  }
   0xc   :  { %4954 = vmatpush3.msra.mxu0 %v5649_v15  ;;  %4973 = vmatprep.subr.mxu1 %v5520_v2  ;;  %vm102_vm12 = vcmp.eq.s32.totalorder %v101_v30, 0  ;;  %vm107_vm14 = vcmp.eq.s32.totalorder %v101_v30, 28  ;;  %v5522_v33 = vmov 1.0   ;;  %vm89_vm3 = vcmp.ge.s32.totalorder %v5626_v11, 3  ;;  %s5524_s25 = smov 96   ;;  %s5525_s26 = smov 32  }
   0xd   :  { %4955 = vmatprep.subr.mxu0 %v5520_v2  ;;  %4975 = vmatprep.mubr.msk.f32.mxu1 %vm5521_vm7, %v5520_v2  ;;  %vm103_vm15 = vmand %vm99_vm11, %vm102_vm12  ;;  %vm90_vm5 = vcmp.lt.s32.totalorder %v5626_v11, 6  ;;  %vm92_vm11 = vcmp.ge.s32.totalorder %v5592_v6, 3  ;;  %vm84_vm12 = vcmp.lt.s32.totalorder %v5626_v11, 3  ;;  %s5526_s27 = smov 64   ;;  %s5527_s28 = smov 68  }
   0xe   :  { %4956 = vmatpush3.msra.mxu0 %v5660_v18  ;;  %vm108_vm0 = vmand %vm104_vm13, %vm107_vm14  ;;  %vm87_vm13 = vcmp.lt.s32.totalorder %v5592_v6, 3  ;;  %s5528_s29 = smov 124  }
   0xf   :  { %4957 = vmatprep.subr.mxu0 %v5520_v2  ;;  %vm5696_vm2 = vmor %vm103_vm15, %vm108_vm0  ;;  %vm94_vm15 = vcmp.lt.s32.totalorder %v5592_v6, 6 }
  0x10   :  { %4958 = vmatpush3.msra.mxu0 %v5672_v20  ;;  %4974 = vmatpush3.msk.msra.mxu1 %vm5696_vm2, %v5522_v33  ;;  %vm91_vm6 = vmand %vm89_vm3, %vm90_vm5  ;;  %vm363_vm3 = vcmask 1045504  }
  0x11   :  { %4960 = vmatmul.mubr.msk.f32.vlgmr.msra.gmra.mxu0 %vm6533_vm8, %v5674_v21  ;;  %4983 = vmatprep.subr.mxu0 %v5520_v2  ;;  %vm93_vm14 = vmand %vm91_vm6, %vm92_vm11  ;;  %vm277_vm8 = vcmask 64512   ;;  %vm62_vm6 = vcmp.eq.s32.totalorder %v5626_v11, 0  ;;  %vm64_vm11 = vcmp.eq.s32.totalorder %v5626_v11, 3 }
  0x12   :  { %4985 = vmatprep.mubr.msk.f32.mxu0 %vm5521_vm7, %v5520_v2  ;;  %4978 = vmatprep.subr.mxu1 %v5520_v2  ;;  %vm88_vm0 = vmand %vm84_vm12, %vm87_vm13  ;;  %vm69_vm13 = vcmp.eq.s32.totalorder %v5626_v11, 1 }
  0x13   :  { %vm63_vm12 = vmand %vm62_vm6, %vm47_vm1 }
  0xca   :  { %v267_v22 = vpop.f32.mrf.mxu1 }
  0xcc   :  { %v4972_v23 = vpop.f32.mrf.mxu1 }
  0xd1   :  { %v193_v24 = vpop.f32.mrf.mxu0 }
  0xd2   :  { %v268_v26 = vadd.f32 %v267_v22, %v193_v24 }
  0xd3   :  { %v4961_v27 = vpop.f32.mrf.mxu0 }
  0xd4   :  { %v272_v28 = vadd.f32 %v271_v25, %v268_v26 }
  0xd6   :  { %5396 = vtanh.f32 %v272_v28  ;;  %v351_v29 = vsel %vm6532_vm9, %v272_v28, -inf }
  0xd7   :  { %352 = vmax.xlane.f32.xlu0 %v351_v29  ;;  %v4662_v29 = vld [vmem:[%s6524_s0 + $0x2] sm:$0x3] }
  0xe3   :  { %v5694_v31 = vpop.eup %5396 }
  0xe4   :  { %691 = vst.msk [vmem:[#allocation2] sm:$0x3] %vm6531_vm10, %v5694_v31  ;;  %vm95_vm10 = vmand %vm93_vm14, %vm94_vm15  ;;  %vm71_vm15 = vcmp.eq.s32.totalorder %v5626_v11, 4 }
  0xe5   :  { %vm96_vm9 = vmor %vm88_vm0, %vm95_vm10  ;;  %vm360_vm10 = vcmask 48128  }
  0xe6   :  { %v5715_v37 = vsel %vm96_vm9, 1.0, %v5520_v2  ;;  %vm60_vm9 = vcmp.ge.s32.totalorder %v5592_v6, 32 }
  0xe7   :  { %vm5732_vm5 = vmand %vm60_vm9, %vm50_vm4 }
  0xe8   :  { %vm65_vm14 = vmand %vm64_vm11, %vm5732_vm5  ;;  %vm76_vm11 = vcmp.eq.s32.totalorder %v5626_v11, 2 }
  0xe9   :  { %vm66_vm0 = vmor %vm63_vm12, %vm65_vm14  ;;  %vm78_vm12 = vcmp.eq.s32.totalorder %v5626_v11, 5 }
  0xea   :  { %v5745_v46 = vsel %vm66_vm0, 1.0, %v5520_v2  ;;  %vm70_vm4 = vmand %vm69_vm13, %vm47_vm1  ;;  %vm667_vm0 = vcmask 1048064  }
  0xeb   :  { %4984 = vmatpush3.msk.msra.mxu0 %vm363_vm3, %v5745_v46  ;;  %vm72_vm9 = vmand %vm71_vm15, %vm5732_vm5 }
  0xec   :  { %vm73_vm6 = vmor %vm70_vm4, %vm72_vm9  ;;  %4993 = vmatprep.subr.mxu0 %v5520_v2  ;;  %vm38_vm4 = vcmp.lt.s32.totalorder %v5592_v6, 28  ;;  %vm40_vm9 = vcmp.ge.s32.totalorder %v5592_v6, 36 }
  0xed   :  { %275 = vrot.lane.b32.xlu0 %v5694_v31, %s5523_s24  ;;  %v5756_v48 = vsel %vm73_vm6, 1.0, %v5520_v2  ;;  %vm77_vm13 = vmand %vm76_vm11, %vm47_vm1  ;;  %vm197_vm1 = vcmask 261120   ;;  %vm41_vm6 = vcmp.lt.s32.totalorder %v5592_v6, 60 }
  0xee   :  { %vm79_vm14 = vmand %vm78_vm12, %vm5732_vm5  ;;  %vm37_vm5 = vcmp.ge.s32.totalorder %v5592_v6, 4 }
  0xef   :  { %vm80_vm15 = vmor %vm77_vm13, %vm79_vm14  ;;  %vm6538_vm14 = vcmask 523264  }
  0xf0   :  { %v5771_v51 = vsel %vm80_vm15, 1.0, %v5520_v2  ;;  %vm39_vm11 = vmand %vm37_vm5, %vm38_vm4  ;;  %vm6539_vm15 = vcmask 304384  }
  0xf1   :  { %vm42_vm12 = vmand %vm40_vm9, %vm41_vm6 }
  0xf2   :  { %vm43_vm13 = vmor %vm39_vm11, %vm42_vm12 }
  0xf3   :  { %v5830_v24 = vsel %vm43_vm13, 1.0, %v5520_v2  ;;  %vm6540_vm5 = vmmov %vm6538_vm14  ;;  %vm6546_vm13 = vcmask 254976  }
  0xf4   :  { %vm6541_vm4 = vmmov %vm6539_vm15 }
  0xf5   :  { %vm6542_vm9 = vmmov %vm6540_vm5 }
  0xf6   :  { %vm6543_vm6 = vmmov %vm6541_vm4 }
  0xf7   :  { %vm6544_vm11 = vmmov %vm6540_vm5 }
  0xf8   :  { %vm6545_vm12 = vmmov %vm6541_vm4 }
 0x160   :  { %v353_v34 = vpop.xlane.xlu0 %352 }
 0x161   :  { %v354_v35 = vsub.f32 %v272_v28, %v353_v34 }
 0x163   :  { %v355_v36 = vmul.f32 1.442695, %v354_v35 }
 0x164   :  { %v276_v38 = vpop.permute.xlu0 %275 }
 0x165   :  { %5398 = vpow2.f32 %v355_v36  ;;  %4976 = vmatmul.mubr.msk.f32.vlgmr.msra.gmra.mxu1 %vm277_vm8, %v276_v38 }
 0x166   :  { %4979 = vmatpush3.msk.msra.mxu1 %vm363_vm3, %v5715_v37  ;;  %4980 = vmatprep.mubr.msk.f32.mxu1 %vm5521_vm7, %v5520_v2 }
 0x167   :  { %4988 = vmatprep.subr.mxu1 %v5520_v2 }
 0x172   :  { %v5399_v39 = vpop.eup %5398 }
 0x173   :  { %358 = vrot.lane.b32.xlu1 %v5399_v39, %s5524_s25 }
 0x1e5   :  { %v359_v40 = vpop.permute.xlu1 %358 }
 0x1e6   :  { %4981 = vmatmul.mubr.msk.f32.vlgmr.msra.gmra.mxu1 %vm360_vm10, %v359_v40 }
 0x1e7   :  { %4990 = vmatprep.mubr.msk.f32.mxu1 %vm5521_vm7, %v5520_v2  ;;  %4989 = vmatpush3.msk.msra.mxu1 %vm363_vm3, %v5756_v48 }
 0x1e8   :  { %4998 = vmatprep.subr.mxu1 %v5520_v2 }
 0x225   :  { %v5727_v41 = vpop.f32.mrf.mxu1 }
 0x227   :  { %v4977_v42 = vpop.f32.mrf.mxu1 }
 0x2a6   :  { %v433_v43 = vpop.f32.mrf.mxu1 }
 0x2a7   :  { %5400 = vrcp.f32 %v433_v43 }
 0x2a8   :  { %v4982_v44 = vpop.f32.mrf.mxu1 }
 0x2b4   :  { %v5401_v47 = vpop.eup %5400 }
 0x2b5   :  { %439 = vrot.lane.b32.xlu1 %v5401_v47, %s5525_s26 }
 0x327   :  { %v440_v49 = vpop.permute.xlu1 %439 }
 0x328   :  { %v442_v50 = vmul.f32 %v5399_v39, %v440_v49 }
 0x32a   :  { %444 = vrot.lane.b32.xlu1 %v442_v50, %s5524_s25 }
 0x32e   :  { %668 = vrot.lane.b32.xlu1 %v5674_v21, %s5526_s27 }
 0x39c   :  { %v445_v52 = vpop.permute.xlu1 %444 }
 0x39d   :  { %4986 = vmatmul.mubr.msk.f32.vlgmr.msra.gmra.mxu0 %vm360_vm10, %v445_v52  ;;  %4991 = vmatmul.mubr.msk.f32.vlgmr.msra.gmra.mxu1 %vm360_vm10, %v445_v52 }
 0x39e   :  { %4994 = vmatpush3.msk.msra.mxu0 %vm363_vm3, %v5771_v51  ;;  %4995 = vmatprep.mubr.msk.f32.mxu0 %vm5521_vm7, %v5520_v2 }
 0x39f   :  { %5017 = vmatprep.subr.mxu0 %v5520_v2  ;;  %4999 = vmatpush3.msra.mxu1 %v5571_v0 }
 0x3a0   :  { %v669_v53 = vpop.permute.xlu1 %668  ;;  %5000 = vmatprep.subr.mxu1 %v5520_v2  ;;  %5014 = vmatprep.mubr.msk.f32.mxu1 %vm5521_vm7, %v5520_v2 }
 0x3a1   :  { %4996 = vmatmul.mubr.msk.f32.vlgmr.msra.gmra.mxu0 %vm360_vm10, %v445_v52  ;;  %v670_v54 = vsel %vm667_vm0, %v669_v53, %v5674_v21  ;;  %5001 = vmatpush3.msra.mxu1 %v5577_v3 }
 0x3a2   :  { %5018 = vmatpush3.msra.mxu0 %v5583_v4  ;;  %671 = vrot.lane.b32.xlu1 %v670_v54, %s5526_s27 }
 0x3a3   :  { %5019 = vmatprep.subr.mxu0 %v5520_v2  ;;  %5025 = vmatprep.mubr.msk.f32.mxu0 %vm5521_vm7, %v5520_v2 }
 0x3a4   :  { %5020 = vmatpush3.msra.mxu0 %v5590_v5  ;;  %5002 = vmatprep.subr.mxu1 %v5520_v2 }
 0x3a5   :  { %5021 = vmatprep.subr.mxu0 %v5520_v2  ;;  %5003 = vmatpush3.msra.mxu1 %v5598_v7 }
 0x3a6   :  { %5022 = vmatpush3.msra.mxu0 %v5604_v8  ;;  %5004 = vmatprep.subr.mxu1 %v5520_v2 }
 0x3a7   :  { %5023 = vmatprep.subr.mxu0 %v5520_v2  ;;  %5005 = vmatpush3.msra.mxu1 %v5615_v9 }
 0x3a8   :  { %5024 = vmatpush3.msra.mxu0 %v5621_v10  ;;  %5006 = vmatprep.subr.mxu1 %v5520_v2 }
 0x3a9   :  { %5026 = vmatmul.mubr.msk.f32.vlgmr.msra.gmra.mxu0 %vm197_vm1, %v5694_v31  ;;  %5007 = vmatpush3.msra.mxu1 %v5636_v12 }
 0x3aa   :  { %5008 = vmatprep.subr.mxu1 %v5520_v2  ;;  %5028 = vmatprep.subr.mxu0 %v5520_v2 }
 0x3ab   :  { %5009 = vmatpush3.msra.mxu1 %v5649_v15  ;;  %5029 = vmatpush3.msk.msra.mxu0 %vm5696_vm2, %v5522_v33 }
 0x3ac   :  { %5010 = vmatprep.subr.mxu1 %v5520_v2  ;;  %5030 = vmatprep.mubr.msk.f32.mxu0 %vm5521_vm7, %v5520_v2 }
 0x3ad   :  { %5011 = vmatpush3.msra.mxu1 %v5660_v18  ;;  %5033 = vmatprep.subr.mxu0 %v5520_v2 }
 0x3ae   :  { %5012 = vmatprep.subr.mxu1 %v5520_v2 }
 0x3af   :  { %5013 = vmatpush3.msra.mxu1 %v5672_v20 }
 0x3b0   :  { %5038 = vmatprep.subr.mxu1 %v5520_v2 }
 0x414   :  { %v672_v55 = vpop.permute.xlu1 %671 }
 0x415   :  { %v673_v56 = vsel %vm667_vm0, %v672_v55, %v5674_v21 }
 0x416   :  { %675 = vrot.lane.b32.xlu1 %v673_v56, %s5527_s28 }
 0x41a   :  { %679 = vrot.lane.b32.xlu1 %v673_v56, %s5528_s29 }
 0x45d   :  { %v517_v57 = vpop.f32.mrf.mxu0  ;;  %v590_v58 = vpop.f32.mrf.mxu1 }
 0x45e   :  { %v687_v26 = vmul.f32 %v517_v57, %v5727_v41 }
 0x45f   :  { %v4987_v59 = vpop.f32.mrf.mxu0  ;;  %v4992_v60 = vpop.f32.mrf.mxu1 }
 0x461   :  { %v663_v61 = vpop.f32.mrf.mxu0 }
 0x462   :  { %v684_v22 = vmul.f32 %v663_v61, %v5674_v21 }
 0x463   :  { %v4997_v62 = vpop.f32.mrf.mxu0 }
 0x469   :  { %v833_v63 = vpop.f32.mrf.mxu0 }
 0x46b   :  { %v5027_v1 = vpop.f32.mrf.mxu0 }
 0x488   :  { %v676_v13 = vpop.permute.xlu1 %675 }
 0x489   :  { %v678_v16 = vmul.f32 %v676_v13, %v517_v57 }
 0x48c   :  { %v680_v14 = vpop.permute.xlu1 %679 }
 0x48d   :  { %v682_v17 = vmul.f32 %v680_v14, %v590_v58 }
 0x48f   :  { %v683_v23 = vadd.f32 %v682_v17, %v678_v16 }
 0x491   :  { %v685_v25 = vadd.f32 %v684_v22, %v683_v23 }
 0x493   :  { %v686_v27 = vmul.f32 %v5830_v24, %v685_v25 }
 0x495   :  { %v688_v28 = vadd.f32 %v687_v26, %v686_v27 }
 0x497   :  { %v5835_v6 = vadd.f32 %v688_v28, %v5664_v19 }
 0x499   :  { %5015 = vmatmul.mubr.msk.f32.vlgmr.msra.gmra.mxu1 %vm6538_vm14, %v5835_v6  ;;  %vm6547_vm14 = vmmov %vm6540_vm5 }
 0x49a   :  { %5039 = vmatpush3.msk.msra.mxu1 %vm363_vm3, %v5745_v46  ;;  %5040 = vmatprep.mubr.msk.f32.mxu1 %vm5521_vm7, %v5520_v2 }
 0x49b   :  { %5048 = vmatprep.subr.mxu1 %v5520_v2 }
 0x559   :  { %v761_v21 = vpop.f32.mrf.mxu1 }
 0x55a   :  { %v834_v30 = vadd.f32 %v833_v63, %v761_v21 }
 0x55b   :  { %v5016_v31 = vpop.f32.mrf.mxu1 }
 0x55c   :  { %v839_v34 = vadd.f32 %v4662_v29, %v834_v30  ;;  %v4675_v31 = vld [vmem:[%s6524_s0 + $0x4] sm:$0x3] }
 0x55e   :  { %5402 = vtanh.f32 %v839_v34  ;;  %v916_v35 = vsel %vm6539_vm15, %v839_v34, -inf  ;;  %vm6548_vm15 = vmmov %vm6541_vm4 }
 0x55f   :  { %917 = vmax.xlane.f32.xlu0 %v916_v35 }
 0x56b   :  { %v5848_v36 = vpop.eup %5402 }
 0x56c   :  { %842 = vrot.lane.b32.xlu1 %v5848_v36, %s5523_s24 }
 0x5de   :  { %v843_v38 = vpop.permute.xlu1 %842 }
 0x5df   :  { %5031 = vmatmul.mubr.msk.f32.vlgmr.msra.gmra.mxu0 %vm277_vm8, %v843_v38 }
 0x5e0   :  { %5034 = vmatpush3.msk.msra.mxu0 %vm363_vm3, %v5715_v37  ;;  %5035 = vmatprep.mubr.msk.f32.mxu0 %vm5521_vm7, %v5520_v2 }
 0x5e1   :  { %5043 = vmatprep.subr.mxu0 %v5520_v2 }
 0x5e8   :  { %v918_v39 = vpop.xlane.xlu0 %917 }
 0x5e9   :  { %v919_v40 = vsub.f32 %v839_v34, %v918_v39 }
 0x5eb   :  { %v920_v41 = vmul.f32 1.442695, %v919_v40 }
 0x5ed   :  { %5404 = vpow2.f32 %v920_v41 }
 0x5fa   :  { %v5405_v42 = vpop.eup %5404 }
 0x5fb   :  { %923 = vrot.lane.b32.xlu1 %v5405_v42, %s5524_s25 }
 0x66d   :  { %v924_v43 = vpop.permute.xlu1 %923 }
 0x66e   :  { %5036 = vmatmul.mubr.msk.f32.vlgmr.msra.gmra.mxu0 %vm360_vm10, %v924_v43 }
 0x66f   :  { %5044 = vmatpush3.msk.msra.mxu0 %vm363_vm3, %v5756_v48  ;;  %5045 = vmatprep.mubr.msk.f32.mxu0 %vm5521_vm7, %v5520_v2 }
 0x670   :  { %5053 = vmatprep.subr.mxu0 %v5520_v2 }
 0x69f   :  { %v5865_v44 = vpop.f32.mrf.mxu0 }
 0x6a1   :  { %v5032_v45 = vpop.f32.mrf.mxu0 }
 0x72e   :  { %v993_v47 = vpop.f32.mrf.mxu0 }
 0x72f   :  { %5406 = vrcp.f32 %v993_v47 }
 0x730   :  { %v5037_v49 = vpop.f32.mrf.mxu0 }
 0x73c   :  { %v5407_v50 = vpop.eup %5406 }
 0x73d   :  { %999 = vrot.lane.b32.xlu1 %v5407_v50, %s5525_s26 }
 0x7af   :  { %v1000_v52 = vpop.permute.xlu1 %999 }
 0x7b0   :  { %v1002_v53 = vmul.f32 %v5405_v42, %v1000_v52 }
 0x7b2   :  { %1004 = vrot.lane.b32.xlu1 %v1002_v53, %s5524_s25 }
 0x7b6   :  { %1218 = vrot.lane.b32.xlu1 %v5835_v6, %s5526_s27 }
 0x824   :  { %v1005_v54 = vpop.permute.xlu1 %1004 }
 0x825   :  { %5041 = vmatmul.mubr.msk.f32.vlgmr.msra.gmra.mxu1 %vm360_vm10, %v1005_v54  ;;  %5046 = vmatmul.mubr.msk.f32.vlgmr.msra.gmra.mxu0 %vm360_vm10, %v1005_v54 }
 0x826   :  { %5049 = vmatpush3.msk.msra.mxu1 %vm363_vm3, %v5771_v51  ;;  %5050 = vmatprep.mubr.msk.f32.mxu1 %vm5521_vm7, %v5520_v2 }
 0x827   :  { %5072 = vmatprep.subr.mxu1 %v5520_v2  ;;  %5054 = vmatpush3.msra.mxu0 %v5571_v0 }
 0x828   :  { %v1219_v55 = vpop.permute.xlu1 %1218  ;;  %5055 = vmatprep.subr.mxu0 %v5520_v2  ;;  %5069 = vmatprep.mubr.msk.f32.mxu0 %vm5521_vm7, %v5520_v2 }
 0x829   :  { %5051 = vmatmul.mubr.msk.f32.vlgmr.msra.gmra.mxu1 %vm360_vm10, %v1005_v54  ;;  %v1220_v56 = vsel %vm667_vm0, %v1219_v55, %v5835_v6  ;;  %5056 = vmatpush3.msra.mxu0 %v5577_v3 }
 0x82a   :  { %5073 = vmatpush3.msra.mxu1 %v5583_v4  ;;  %1221 = vrot.lane.b32.xlu1 %v1220_v56, %s5526_s27 }
 0x82b   :  { %5074 = vmatprep.subr.mxu1 %v5520_v2  ;;  %5080 = vmatprep.mubr.msk.f32.mxu1 %vm5521_vm7, %v5520_v2 }
 0x82c   :  { %5075 = vmatpush3.msra.mxu1 %v5590_v5  ;;  %5057 = vmatprep.subr.mxu0 %v5520_v2 }
 0x82d   :  { %5076 = vmatprep.subr.mxu1 %v5520_v2  ;;  %5058 = vmatpush3.msra.mxu0 %v5598_v7 }
 0x82e   :  { %5077 = vmatpush3.msra.mxu1 %v5604_v8  ;;  %5059 = vmatprep.subr.mxu0 %v5520_v2 }
 0x82f   :  { %5078 = vmatprep.subr.mxu1 %v5520_v2  ;;  %5060 = vmatpush3.msra.mxu0 %v5615_v9 }
 0x830   :  { %5079 = vmatpush3.msra.mxu1 %v5621_v10  ;;  %5061 = vmatprep.subr.mxu0 %v5520_v2 }
 0x831   :  { %5081 = vmatmul.mubr.msk.f32.vlgmr.msra.gmra.mxu1 %vm197_vm1, %v5848_v36  ;;  %5062 = vmatpush3.msra.mxu0 %v5636_v12 }
 0x832   :  { %5063 = vmatprep.subr.mxu0 %v5520_v2  ;;  %5083 = vmatprep.subr.mxu1 %v5520_v2 }
 0x833   :  { %5064 = vmatpush3.msra.mxu0 %v5649_v15  ;;  %5084 = vmatpush3.msk.msra.mxu1 %vm5696_vm2, %v5522_v33 }
 0x834   :  { %5065 = vmatprep.subr.mxu0 %v5520_v2  ;;  %5085 = vmatprep.mubr.msk.f32.mxu1 %vm5521_vm7, %v5520_v2 }
 0x835   :  { %5066 = vmatpush3.msra.mxu0 %v5660_v18  ;;  %5088 = vmatprep.subr.mxu1 %v5520_v2 }
 0x836   :  { %5067 = vmatprep.subr.mxu0 %v5520_v2 }
 0x837   :  { %5068 = vmatpush3.msra.mxu0 %v5672_v20 }
 0x838   :  { %5093 = vmatprep.subr.mxu0 %v5520_v2 }
 0x89c   :  { %v1222_v57 = vpop.permute.xlu1 %1221 }
 0x89d   :  { %v1223_v58 = vsel %vm667_vm0, %v1222_v57, %v5835_v6 }
 0x89e   :  { %1225 = vrot.lane.b32.xlu1 %v1223_v58, %s5527_s28 }
 0x8a2   :  { %1229 = vrot.lane.b32.xlu1 %v1223_v58, %s5528_s29 }
 0x8e5   :  { %v1074_v59 = vpop.f32.mrf.mxu1  ;;  %v1144_v60 = vpop.f32.mrf.mxu0 }
 0x8e6   :  { %v1237_v28 = vmul.f32 %v1074_v59, %v5865_v44 }
 0x8e7   :  { %v5042_v61 = vpop.f32.mrf.mxu1  ;;  %v5047_v62 = vpop.f32.mrf.mxu0 }
 0x8e9   :  { %v1214_v63 = vpop.f32.mrf.mxu1 }
 0x8ea   :  { %v1234_v25 = vmul.f32 %v1214_v63, %v5835_v6 }
 0x8eb   :  { %v5052_v1 = vpop.f32.mrf.mxu1 }
 0x8f1   :  { %v1393_v13 = vpop.f32.mrf.mxu1 }
 0x8f3   :  { %v5082_v14 = vpop.f32.mrf.mxu1 }
 0x910   :  { %v1226_v16 = vpop.permute.xlu1 %1225 }
 0x911   :  { %v1228_v22 = vmul.f32 %v1226_v16, %v1074_v59 }
 0x914   :  { %v1230_v17 = vpop.permute.xlu1 %1229 }
 0x915   :  { %v1232_v23 = vmul.f32 %v1230_v17, %v1144_v60 }
 0x917   :  { %v1233_v26 = vadd.f32 %v1232_v23, %v1228_v22 }
 0x919   :  { %v1235_v27 = vadd.f32 %v1234_v25, %v1233_v26 }
 0x91b   :  { %v1236_v21 = vmul.f32 %v5830_v24, %v1235_v27 }
 0x91d   :  { %v1238_v29 = vadd.f32 %v1237_v28, %v1236_v21 }
 0x91f   :  { %v5926_v30 = vadd.f32 %v1238_v29, %v5664_v19 }
 0x921   :  { %5070 = vmatmul.mubr.msk.f32.vlgmr.msra.gmra.mxu0 %vm6540_vm5, %v5926_v30 }
 0x922   :  { %5094 = vmatpush3.msk.msra.mxu0 %vm363_vm3, %v5745_v46  ;;  %5095 = vmatprep.mubr.msk.f32.mxu0 %vm5521_vm7, %v5520_v2 }
 0x923   :  { %5103 = vmatprep.subr.mxu0 %v5520_v2 }
 0x9e1   :  { %v1321_v6 = vpop.f32.mrf.mxu0 }
 0x9e2   :  { %v1394_v34 = vadd.f32 %v1393_v13, %v1321_v6 }
 0x9e3   :  { %v5071_v35 = vpop.f32.mrf.mxu0 }
 0x9e4   :  { %v1399_v38 = vadd.f32 %v4675_v31, %v1394_v34 }
 0x9e6   :  { %5408 = vtanh.f32 %v1399_v38  ;;  %v1476_v39 = vsel %vm6541_vm4, %v1399_v38, -inf }
 0x9e7   :  { %1477 = vmax.xlane.f32.xlu0 %v1476_v39 }
 0x9f3   :  { %v5939_v40 = vpop.eup %5408 }
 0x9f4   :  { %1402 = vrot.lane.b32.xlu1 %v5939_v40, %s5523_s24 }
 0xa66   :  { %v1403_v41 = vpop.permute.xlu1 %1402 }
 0xa67   :  { %5086 = vmatmul.mubr.msk.f32.vlgmr.msra.gmra.mxu1 %vm277_vm8, %v1403_v41 }
 0xa68   :  { %5089 = vmatpush3.msk.msra.mxu1 %vm363_vm3, %v5715_v37  ;;  %5090 = vmatprep.mubr.msk.f32.mxu1 %vm5521_vm7, %v5520_v2 }
 0xa69   :  { %5098 = vmatprep.subr.mxu1 %v5520_v2 }
 0xa70   :  { %v1478_v42 = vpop.xlane.xlu0 %1477 }
 0xa71   :  { %v1479_v43 = vsub.f32 %v1399_v38, %v1478_v42  ;;  %v4688_v38 = vld [vmem:[%s6524_s0 + $0x6] sm:$0x3] }
 0xa73   :  { %v1480_v44 = vmul.f32 1.442695, %v1479_v43 }
 0xa75   :  { %5410 = vpow2.f32 %v1480_v44 }
 0xa82   :  { %v5411_v45 = vpop.eup %5410 }
 0xa83   :  { %1483 = vrot.lane.b32.xlu0 %v5411_v45, %s5524_s25 }
 0xaf5   :  { %v1484_v47 = vpop.permute.xlu0 %1483 }
 0xaf6   :  { %5091 = vmatmul.mubr.msk.f32.vlgmr.msra.gmra.mxu1 %vm360_vm10, %v1484_v47 }
 0xaf7   :  { %5099 = vmatpush3.msk.msra.mxu1 %vm363_vm3, %v5756_v48  ;;  %5100 = vmatprep.mubr.msk.f32.mxu1 %vm5521_vm7, %v5520_v2 }
 0xaf8   :  { %5108 = vmatprep.subr.mxu1 %v5520_v2 }
 0xb27   :  { %v5956_v49 = vpop.f32.mrf.mxu1 }
 0xb29   :  { %v5087_v50 = vpop.f32.mrf.mxu1 }
 0xbb6   :  { %v1553_v52 = vpop.f32.mrf.mxu1 }
 0xbb7   :  { %5412 = vrcp.f32 %v1553_v52 }
 0xbb8   :  { %v5092_v53 = vpop.f32.mrf.mxu1 }
 0xbc4   :  { %v5413_v54 = vpop.eup %5412 }
 0xbc5   :  { %1559 = vrot.lane.b32.xlu1 %v5413_v54, %s5525_s26 }
 0xc37   :  { %v1560_v55 = vpop.permute.xlu1 %1559 }
 0xc38   :  { %v1562_v56 = vmul.f32 %v5411_v45, %v1560_v55 }
 0xc3a   :  { %1564 = vrot.lane.b32.xlu1 %v1562_v56, %s5524_s25 }
 0xc3e   :  { %1778 = vrot.lane.b32.xlu1 %v5926_v30, %s5526_s27 }
 0xcac   :  { %v1565_v57 = vpop.permute.xlu1 %1564 }
 0xcad   :  { %5096 = vmatmul.mubr.msk.f32.vlgmr.msra.gmra.mxu0 %vm360_vm10, %v1565_v57  ;;  %5101 = vmatmul.mubr.msk.f32.vlgmr.msra.gmra.mxu1 %vm360_vm10, %v1565_v57 }
 0xcae   :  { %5104 = vmatpush3.msk.msra.mxu0 %vm363_vm3, %v5771_v51  ;;  %5105 = vmatprep.mubr.msk.f32.mxu0 %vm5521_vm7, %v5520_v2 }
 0xcaf   :  { %5127 = vmatprep.subr.mxu0 %v5520_v2  ;;  %5109 = vmatpush3.msra.mxu1 %v5571_v0 }
 0xcb0   :  { %v1779_v58 = vpop.permute.xlu1 %1778  ;;  %5110 = vmatprep.subr.mxu1 %v5520_v2  ;;  %5124 = vmatprep.mubr.msk.f32.mxu1 %vm5521_vm7, %v5520_v2 }
 0xcb1   :  { %5106 = vmatmul.mubr.msk.f32.vlgmr.msra.gmra.mxu0 %vm360_vm10, %v1565_v57  ;;  %v1780_v59 = vsel %vm667_vm0, %v1779_v58, %v5926_v30  ;;  %5111 = vmatpush3.msra.mxu1 %v5577_v3 }
 0xcb2   :  { %5128 = vmatpush3.msra.mxu0 %v5583_v4  ;;  %1781 = vrot.lane.b32.xlu1 %v1780_v59, %s5526_s27 }
 0xcb3   :  { %5129 = vmatprep.subr.mxu0 %v5520_v2  ;;  %5135 = vmatprep.mubr.msk.f32.mxu0 %vm5521_vm7, %v5520_v2 }
 0xcb4   :  { %5130 = vmatpush3.msra.mxu0 %v5590_v5  ;;  %5112 = vmatprep.subr.mxu1 %v5520_v2 }
 0xcb5   :  { %5131 = vmatprep.subr.mxu0 %v5520_v2  ;;  %5113 = vmatpush3.msra.mxu1 %v5598_v7 }
 0xcb6   :  { %5132 = vmatpush3.msra.mxu0 %v5604_v8  ;;  %5114 = vmatprep.subr.mxu1 %v5520_v2 }
 0xcb7   :  { %5133 = vmatprep.subr.mxu0 %v5520_v2  ;;  %5115 = vmatpush3.msra.mxu1 %v5615_v9 }
 0xcb8   :  { %5134 = vmatpush3.msra.mxu0 %v5621_v10  ;;  %5116 = vmatprep.subr.mxu1 %v5520_v2 }
 0xcb9   :  { %5136 = vmatmul.mubr.msk.f32.vlgmr.msra.gmra.mxu0 %vm197_vm1, %v5939_v40  ;;  %5117 = vmatpush3.msra.mxu1 %v5636_v12 }
 0xcba   :  { %5118 = vmatprep.subr.mxu1 %v5520_v2  ;;  %5138 = vmatprep.subr.mxu0 %v5520_v2 }
 0xcbb   :  { %5119 = vmatpush3.msra.mxu1 %v5649_v15  ;;  %5139 = vmatpush3.msk.msra.mxu0 %vm5696_vm2, %v5522_v33 }
 0xcbc   :  { %5120 = vmatprep.subr.mxu1 %v5520_v2  ;;  %5140 = vmatprep.mubr.msk.f32.mxu0 %vm5521_vm7, %v5520_v2 }
 0xcbd   :  { %5121 = vmatpush3.msra.mxu1 %v5660_v18  ;;  %5143 = vmatprep.subr.mxu0 %v5520_v2 }
 0xcbe   :  { %5122 = vmatprep.subr.mxu1 %v5520_v2 }
 0xcbf   :  { %5123 = vmatpush3.msra.mxu1 %v5672_v20 }
 0xcc0   :  { %5148 = vmatprep.subr.mxu1 %v5520_v2 }
 0xd24   :  { %v1782_v60 = vpop.permute.xlu1 %1781 }
 0xd25   :  { %v1783_v61 = vsel %vm667_vm0, %v1782_v60, %v5926_v30 }
 0xd26   :  { %1789 = vrot.lane.b32.xlu0 %v1783_v61, %s5528_s29  ;;  %1785 = vrot.lane.b32.xlu1 %v1783_v61, %s5527_s28 }
 0xd6d   :  { %v1634_v62 = vpop.f32.mrf.mxu0  ;;  %v1704_v63 = vpop.f32.mrf.mxu1 }
 0xd6e   :  { %v1797_v6 = vmul.f32 %v1634_v62, %v5956_v49 }
 0xd6f   :  { %v5097_v1 = vpop.f32.mrf.mxu0  ;;  %v5102_v13 = vpop.f32.mrf.mxu1 }
 0xd71   :  { %v1774_v14 = vpop.f32.mrf.mxu0 }
 0xd72   :  { %v1794_v28 = vmul.f32 %v1774_v14, %v5926_v30 }
 0xd73   :  { %v5107_v16 = vpop.f32.mrf.mxu0 }
 0xd79   :  { %v1953_v17 = vpop.f32.mrf.mxu0 }
 0xd7b   :  { %v5137_v22 = vpop.f32.mrf.mxu0 }
 0xd98   :  { %v1790_v23 = vpop.permute.xlu0 %1789  ;;  %v1786_v25 = vpop.permute.xlu1 %1785 }
 0xd99   :  { %v1792_v26 = vmul.f32 %v1790_v23, %v1704_v63  ;;  %v1788_v27 = vmul.f32 %v1786_v25, %v1634_v62 }
 0xd9b   :  { %v1793_v21 = vadd.f32 %v1792_v26, %v1788_v27 }
 0xd9d   :  { %v1795_v29 = vadd.f32 %v1794_v28, %v1793_v21  ;;  %v4701_v28 = vld [vmem:[%s6524_s0 + $0x8] sm:$0x3] }
 0xd9f   :  { %v1796_v31 = vmul.f32 %v5830_v24, %v1795_v29 }
 0xda1   :  { %v1798_v34 = vadd.f32 %v1797_v6, %v1796_v31 }
 0xda3   :  { %v6017_v35 = vadd.f32 %v1798_v34, %v5664_v19 }
 0xda5   :  { %5125 = vmatmul.mubr.msk.f32.vlgmr.msra.gmra.mxu1 %vm6542_vm9, %v6017_v35  ;;  %vm6551_vm9 = vmmov %vm6546_vm13 }
 0xda6   :  { %5149 = vmatpush3.msk.msra.mxu1 %vm363_vm3, %v5745_v46  ;;  %5150 = vmatprep.mubr.msk.f32.mxu1 %vm5521_vm7, %v5520_v2 }
 0xda7   :  { %5158 = vmatprep.subr.mxu1 %v5520_v2 }
 0xe65   :  { %v1881_v30 = vpop.f32.mrf.mxu1 }
 0xe66   :  { %v1954_v39 = vadd.f32 %v1953_v17, %v1881_v30 }
 0xe67   :  { %v5126_v41 = vpop.f32.mrf.mxu1 }
 0xe68   :  { %v1959_v42 = vadd.f32 %v4688_v38, %v1954_v39 }
 0xe6a   :  { %5414 = vtanh.f32 %v1959_v42  ;;  %v2036_v43 = vsel %vm6543_vm6, %v1959_v42, -inf }
 0xe6b   :  { %2037 = vmax.xlane.f32.xlu1 %v2036_v43 }
 0xe77   :  { %v6030_v44 = vpop.eup %5414 }
 0xe78   :  { %1962 = vrot.lane.b32.xlu0 %v6030_v44, %s5523_s24 }
 0xeea   :  { %v1963_v45 = vpop.permute.xlu0 %1962 }
 0xeeb   :  { %5141 = vmatmul.mubr.msk.f32.vlgmr.msra.gmra.mxu0 %vm277_vm8, %v1963_v45 }
 0xeec   :  { %5144 = vmatpush3.msk.msra.mxu0 %vm363_vm3, %v5715_v37  ;;  %5145 = vmatprep.mubr.msk.f32.mxu0 %vm5521_vm7, %v5520_v2 }
 0xeed   :  { %5153 = vmatprep.subr.mxu0 %v5520_v2 }
 0xef4   :  { %v2038_v47 = vpop.xlane.xlu1 %2037 }
 0xef5   :  { %v2039_v49 = vsub.f32 %v1959_v42, %v2038_v47 }
 0xef7   :  { %v2040_v50 = vmul.f32 1.442695, %v2039_v49 }
 0xef9   :  { %5416 = vpow2.f32 %v2040_v50 }
 0xf06   :  { %v5417_v52 = vpop.eup %5416 }
 0xf07   :  { %2043 = vrot.lane.b32.xlu0 %v5417_v52, %s5524_s25 }
 0xf79   :  { %v2044_v53 = vpop.permute.xlu0 %2043 }
 0xf7a   :  { %5146 = vmatmul.mubr.msk.f32.vlgmr.msra.gmra.mxu0 %vm360_vm10, %v2044_v53 }
 0xf7b   :  { %5154 = vmatpush3.msk.msra.mxu0 %vm363_vm3, %v5756_v48  ;;  %5155 = vmatprep.mubr.msk.f32.mxu0 %vm5521_vm7, %v5520_v2 }
 0xf7c   :  { %5163 = vmatprep.subr.mxu0 %v5520_v2 }
 0xfab   :  { %v6047_v54 = vpop.f32.mrf.mxu0 }
 0xfad   :  { %v5142_v55 = vpop.f32.mrf.mxu0 }
 0xfae   :  { %v6156_v55 = vld [vmem:[%s6526_s2 + $0x38] sm:$0xff] }
0x103a   :  { %v2113_v56 = vpop.f32.mrf.mxu0 }
0x103b   :  { %5418 = vrcp.f32 %v2113_v56 }
0x103c   :  { %v5147_v57 = vpop.f32.mrf.mxu0 }
0x1048   :  { %v5419_v58 = vpop.eup %5418 }
0x1049   :  { %2119 = vrot.lane.b32.xlu0 %v5419_v58, %s5525_s26  ;;  %v6168_v58 = vld [vmem:[%s6526_s2 + $0x30] sm:$0xff] }
0x10bb   :  { %v2120_v59 = vpop.permute.xlu0 %2119 }
0x10bc   :  { %v2122_v60 = vmul.f32 %v5417_v52, %v2120_v59  ;;  %v6174_v59 = vld [vmem:[%s6525_s1 + $0x18] sm:$0xff] }
0x10be   :  { %2124 = vrot.lane.b32.xlu0 %v2122_v60, %s5524_s25  ;;  %v6184_v60 = vld [vmem:[%s6525_s1 + $0x10] sm:$0xff] }
0x10c2   :  { %2338 = vrot.lane.b32.xlu0 %v6017_v35, %s5526_s27 }
0x1130   :  { %v2125_v61 = vpop.permute.xlu0 %2124 }
0x1131   :  { %5151 = vmatmul.mubr.msk.f32.vlgmr.msra.gmra.mxu1 %vm360_vm10, %v2125_v61  ;;  %5156 = vmatmul.mubr.msk.f32.vlgmr.msra.gmra.mxu0 %vm360_vm10, %v2125_v61 }
0x1132   :  { %5159 = vmatpush3.msk.msra.mxu1 %vm363_vm3, %v5771_v51  ;;  %5160 = vmatprep.mubr.msk.f32.mxu1 %vm5521_vm7, %v5520_v2 }
0x1133   :  { %5182 = vmatprep.subr.mxu1 %v5520_v2  ;;  %5164 = vmatpush3.msra.mxu0 %v5571_v0 }
0x1134   :  { %v2339_v62 = vpop.permute.xlu0 %2338  ;;  %5165 = vmatprep.subr.mxu0 %v5520_v2  ;;  %5179 = vmatprep.mubr.msk.f32.mxu0 %vm5521_vm7, %v5520_v2 }
0x1135   :  { %5161 = vmatmul.mubr.msk.f32.vlgmr.msra.gmra.mxu1 %vm360_vm10, %v2125_v61  ;;  %v2340_v63 = vsel %vm667_vm0, %v2339_v62, %v6017_v35  ;;  %5166 = vmatpush3.msra.mxu0 %v5577_v3  ;;  %v6192_v61 = vld [vmem:[%s6526_s2 + $0x28] sm:$0xff] }
0x1136   :  { %5183 = vmatpush3.msra.mxu1 %v5583_v4  ;;  %2341 = vrot.lane.b32.xlu0 %v2340_v63, %s5526_s27  ;;  %v6198_v62 = vld [vmem:[%s6525_s1 + $0x8] sm:$0xff]  ;;  %v6206_v63 = vld [vmem:[%s6526_s2 + $0x20] sm:$0xff] }
0x1137   :  { %5184 = vmatprep.subr.mxu1 %v5520_v2  ;;  %5190 = vmatprep.mubr.msk.f32.mxu1 %vm5521_vm7, %v5520_v2 }
0x1138   :  { %5185 = vmatpush3.msra.mxu1 %v5590_v5  ;;  %5167 = vmatprep.subr.mxu0 %v5520_v2 }
0x1139   :  { %5186 = vmatprep.subr.mxu1 %v5520_v2  ;;  %5168 = vmatpush3.msra.mxu0 %v5598_v7 }
0x113a   :  { %5187 = vmatpush3.msra.mxu1 %v5604_v8  ;;  %5169 = vmatprep.subr.mxu0 %v5520_v2 }
0x113b   :  { %5188 = vmatprep.subr.mxu1 %v5520_v2  ;;  %5170 = vmatpush3.msra.mxu0 %v5615_v9 }
0x113c   :  { %5189 = vmatpush3.msra.mxu1 %v5621_v10  ;;  %5171 = vmatprep.subr.mxu0 %v5520_v2 }
0x113d   :  { %5191 = vmatmul.mubr.msk.f32.vlgmr.msra.gmra.mxu1 %vm197_vm1, %v6030_v44  ;;  %5172 = vmatpush3.msra.mxu0 %v5636_v12 }
0x113e   :  { %5173 = vmatprep.subr.mxu0 %v5520_v2  ;;  %5193 = vmatprep.subr.mxu1 %v5520_v2 }
0x113f   :  { %5174 = vmatpush3.msra.mxu0 %v5649_v15  ;;  %5194 = vmatpush3.msk.msra.mxu1 %vm5696_vm2, %v5522_v33 }
0x1140   :  { %5175 = vmatprep.subr.mxu0 %v5520_v2  ;;  %5195 = vmatprep.mubr.msk.f32.mxu1 %vm5521_vm7, %v5520_v2 }
0x1141   :  { %5176 = vmatpush3.msra.mxu0 %v5660_v18  ;;  %5198 = vmatprep.subr.mxu1 %v5520_v2 }
0x1142   :  { %5177 = vmatprep.subr.mxu0 %v5520_v2 }
0x1143   :  { %5178 = vmatpush3.msra.mxu0 %v5672_v20 }
0x1144   :  { %5203 = vmatprep.subr.mxu0 %v5520_v2 }
0x11a8   :  { %v2342_v0 = vpop.permute.xlu0 %2341 }
0x11a9   :  { %v2343_v3 = vsel %vm667_vm0, %v2342_v0, %v6017_v35  ;;  %v6212_v0 = vld [vmem:[%s6525_s1] sm:$0xff] }
0x11aa   :  { %2345 = vrot.lane.b32.xlu0 %v2343_v3, %s5527_s28 }
0x11ae   :  { %2349 = vrot.lane.b32.xlu0 %v2343_v3, %s5528_s29  ;;  %v6221_v3 = vld [vmem:[%s6526_s2 + $0x18] sm:$0xff] }
0x11f1   :  { %v2194_v4 = vpop.f32.mrf.mxu1  ;;  %v2264_v5 = vpop.f32.mrf.mxu0 }
0x11f2   :  { %v2357_v22 = vmul.f32 %v2194_v4, %v6047_v54 }
0x11f3   :  { %v5152_v7 = vpop.f32.mrf.mxu1  ;;  %v5157_v8 = vpop.f32.mrf.mxu0 }
0x11f4   :  { %v6249_v7 = vld [vmem:[%s6526_s2] sm:$0xff] }
0x11f5   :  { %v2334_v9 = vpop.f32.mrf.mxu1 }
0x11f6   :  { %v2354_v14 = vmul.f32 %v2334_v9, %v6017_v35 }
0x11f7   :  { %v5162_v10 = vpop.f32.mrf.mxu1 }
0x11fd   :  { %v2513_v12 = vpop.f32.mrf.mxu1 }
0x11ff   :  { %v5192_v15 = vpop.f32.mrf.mxu1 }
0x121c   :  { %v2346_v18 = vpop.permute.xlu0 %2345 }
0x121d   :  { %v2348_v1 = vmul.f32 %v2346_v18, %v2194_v4  ;;  %v6229_v4 = vld [vmem:[%s6526_s2 + $0x10] sm:$0xff] }
0x1220   :  { %v2350_v20 = vpop.permute.xlu0 %2349 }
0x1221   :  { %v2352_v13 = vmul.f32 %v2350_v20, %v2264_v5  ;;  %v6241_v5 = vld [vmem:[%s6526_s2 + $0x8] sm:$0xff] }
0x1223   :  { %v2353_v16 = vadd.f32 %v2352_v13, %v2348_v1 }
0x1225   :  { %v2355_v17 = vadd.f32 %v2354_v14, %v2353_v16 }
0x1227   :  { %v2356_v23 = vmul.f32 %v5830_v24, %v2355_v17 }
0x1229   :  { %v2358_v25 = vadd.f32 %v2357_v22, %v2356_v23 }
0x122b   :  { %v6108_v26 = vadd.f32 %v2358_v25, %v5664_v19 }
0x122d   :  { %5180 = vmatmul.mubr.msk.f32.vlgmr.msra.gmra.mxu0 %vm6544_vm11, %v6108_v26 }
0x122e   :  { %5204 = vmatpush3.msk.msra.mxu0 %vm363_vm3, %v5745_v46  ;;  %5205 = vmatprep.mubr.msk.f32.mxu0 %vm5521_vm7, %v5520_v2 }
0x122f   :  { %5213 = vmatprep.subr.mxu0 %v5520_v2 }
0x12ed   :  { %v2441_v27 = vpop.f32.mrf.mxu0 }
0x12ee   :  { %v2514_v21 = vadd.f32 %v2513_v12, %v2441_v27 }
0x12ef   :  { %v5181_v29 = vpop.f32.mrf.mxu0 }
0x12f0   :  { %v2519_v6 = vadd.f32 %v4701_v28, %v2514_v21 }
0x12f2   :  { %5420 = vtanh.f32 %v2519_v6  ;;  %v2596_v31 = vsel %vm6545_vm12, %v2519_v6, -inf }
0x12f3   :  { %2597 = vmax.xlane.f32.xlu0 %v2596_v31 }
0x12ff   :  { %v6121_v34 = vpop.eup %5420 }
0x1300   :  { %2522 = vrot.lane.b32.xlu1 %v6121_v34, %s5523_s24  ;;  %2920 = vst.msk [vmem:[#allocation2 + $0x2] sm:$0x3] %vm6546_vm13, %v6121_v34 }
0x1372   :  { %v2523_v35 = vpop.permute.xlu1 %2522 }
0x1373   :  { %5196 = vmatmul.mubr.msk.f32.vlgmr.msra.gmra.mxu1 %vm277_vm8, %v2523_v35 }
0x1374   :  { %5199 = vmatpush3.msk.msra.mxu1 %vm363_vm3, %v5715_v37  ;;  %5200 = vmatprep.mubr.msk.f32.mxu1 %vm5521_vm7, %v5520_v2 }
0x1375   :  { %5208 = vmatprep.subr.mxu1 %v5520_v2 }
0x137c   :  { %v2598_v30 = vpop.xlane.xlu0 %2597 }
0x137d   :  { %v2599_v38 = vsub.f32 %v2519_v6, %v2598_v30 }
0x137f   :  { %v2600_v39 = vmul.f32 1.442695, %v2599_v38 }
0x1381   :  { %5422 = vpow2.f32 %v2600_v39 }
0x138e   :  { %v5423_v41 = vpop.eup %5422 }
0x138f   :  { %2603 = vrot.lane.b32.xlu1 %v5423_v41, %s5524_s25 }
0x1401   :  { %v2604_v42 = vpop.permute.xlu1 %2603 }
0x1402   :  { %5201 = vmatmul.mubr.msk.f32.vlgmr.msra.gmra.mxu1 %vm360_vm10, %v2604_v42 }
0x1403   :  { %5209 = vmatpush3.msk.msra.mxu1 %vm363_vm3, %v5756_v48  ;;  %5210 = vmatprep.mubr.msk.f32.mxu1 %vm5521_vm7, %v5520_v2 }
0x1404   :  { %5218 = vmatprep.subr.mxu1 %v5520_v2 }
0x1433   :  { %v6140_v43 = vpop.f32.mrf.mxu1 }
0x1435   :  { %v5197_v45 = vpop.f32.mrf.mxu1 }
0x14c2   :  { %v2673_v47 = vpop.f32.mrf.mxu1 }
0x14c3   :  { %5424 = vrcp.f32 %v2673_v47 }
0x14c4   :  { %v5202_v49 = vpop.f32.mrf.mxu1 }
0x14d0   :  { %v5425_v50 = vpop.eup %5424 }
0x14d1   :  { %2679 = vrot.lane.b32.xlu1 %v5425_v50, %s5525_s26 }
0x1543   :  { %v2680_v52 = vpop.permute.xlu1 %2679 }
0x1544   :  { %v2682_v53 = vmul.f32 %v5423_v41, %v2680_v52 }
0x1546   :  { %2684 = vrot.lane.b32.xlu1 %v2682_v53, %s5524_s25 }
0x154a   :  { %2898 = vrot.lane.b32.xlu1 %v6108_v26, %s5526_s27 }
0x15b8   :  { %v2685_v54 = vpop.permute.xlu1 %2684 }
0x15b9   :  { %5206 = vmatmul.mubr.msk.f32.vlgmr.msra.gmra.mxu0 %vm360_vm10, %v2685_v54  ;;  %5211 = vmatmul.mubr.msk.f32.vlgmr.msra.gmra.mxu1 %vm360_vm10, %v2685_v54 }
0x15ba   :  { %5214 = vmatpush3.msk.msra.mxu0 %vm363_vm3, %v5771_v51  ;;  %5215 = vmatprep.mubr.msk.f32.mxu0 %vm5521_vm7, %v5520_v2 }
0x15bb   :  { %5237 = vmatprep.subr.mxu0 %v5520_v2  ;;  %5219 = vmatpush3.msra.mxu1 %v6156_v55 }
0x15bc   :  { %v2899_v56 = vpop.permute.xlu1 %2898  ;;  %5220 = vmatprep.subr.mxu1 %v5520_v2  ;;  %5234 = vmatprep.mubr.msk.f32.mxu1 %vm5521_vm7, %v5520_v2 }
0x15bd   :  { %5216 = vmatmul.mubr.msk.f32.vlgmr.msra.gmra.mxu0 %vm360_vm10, %v2685_v54  ;;  %v2900_v57 = vsel %vm667_vm0, %v2899_v56, %v6108_v26  ;;  %5221 = vmatpush3.msra.mxu1 %v6168_v58 }
0x15be   :  { %5238 = vmatpush3.msra.mxu0 %v6174_v59  ;;  %2901 = vrot.lane.b32.xlu0 %v2900_v57, %s5526_s27 }
0x15bf   :  { %5239 = vmatprep.subr.mxu0 %v5520_v2  ;;  %5245 = vmatprep.mubr.msk.f32.mxu0 %vm5521_vm7, %v5520_v2 }
0x15c0   :  { %5240 = vmatpush3.msra.mxu0 %v6184_v60  ;;  %5222 = vmatprep.subr.mxu1 %v5520_v2 }
0x15c1   :  { %5241 = vmatprep.subr.mxu0 %v5520_v2  ;;  %5223 = vmatpush3.msra.mxu1 %v6192_v61 }
0x15c2   :  { %5242 = vmatpush3.msra.mxu0 %v6198_v62  ;;  %5224 = vmatprep.subr.mxu1 %v5520_v2 }
0x15c3   :  { %5243 = vmatprep.subr.mxu0 %v5520_v2  ;;  %5225 = vmatpush3.msra.mxu1 %v6206_v63 }
0x15c4   :  { %5244 = vmatpush3.msra.mxu0 %v6212_v0  ;;  %5226 = vmatprep.subr.mxu1 %v5520_v2 }
0x15c5   :  { %5246 = vmatmul.mubr.msk.f32.vlgmr.msra.gmra.mxu0 %vm197_vm1, %v6121_v34  ;;  %5227 = vmatpush3.msra.mxu1 %v6221_v3  ;;  %v4714_v34 = vld [vmem:[%s6524_s0 + $0xa] sm:$0x3] }
0x15c6   :  { %5228 = vmatprep.subr.mxu1 %v5520_v2  ;;  %5248 = vmatprep.subr.mxu0 %v5520_v2 }
0x15c7   :  { %5229 = vmatpush3.msra.mxu1 %v6229_v4  ;;  %5249 = vmatpush3.msk.msra.mxu0 %vm5696_vm2, %v5522_v33 }
0x15c8   :  { %5230 = vmatprep.subr.mxu1 %v5520_v2  ;;  %5250 = vmatprep.mubr.msk.f32.mxu0 %vm5521_vm7, %v5520_v2 }
0x15c9   :  { %5231 = vmatpush3.msra.mxu1 %v6241_v5  ;;  %5253 = vmatprep.subr.mxu0 %v5520_v2 }
0x15ca   :  { %5232 = vmatprep.subr.mxu1 %v5520_v2 }
0x15cb   :  { %5233 = vmatpush3.msra.mxu1 %v6249_v7 }
0x15cc   :  { %5258 = vmatprep.subr.mxu1 %v5520_v2 }
0x1630   :  { %v2902_v8 = vpop.permute.xlu0 %2901 }
0x1631   :  { %v2903_v9 = vsel %vm667_vm0, %v2902_v8, %v6108_v26 }
0x1632   :  { %2905 = vrot.lane.b32.xlu1 %v2903_v9, %s5527_s28 }
0x1636   :  { %2909 = vrot.lane.b32.xlu1 %v2903_v9, %s5528_s29 }
0x1679   :  { %v2754_v10 = vpop.f32.mrf.mxu0  ;;  %v2824_v12 = vpop.f32.mrf.mxu1 }
0x167a   :  { %v2917_v21 = vmul.f32 %v2754_v10, %v6140_v43 }
0x167b   :  { %v5207_v15 = vpop.f32.mrf.mxu0  ;;  %v5212_v18 = vpop.f32.mrf.mxu1 }
0x167d   :  { %v2894_v20 = vpop.f32.mrf.mxu0 }
0x167e   :  { %v2914_v25 = vmul.f32 %v2894_v20, %v6108_v26 }
0x167f   :  { %v5217_v1 = vpop.f32.mrf.mxu0 }
0x1685   :  { %v3062_v13 = vpop.f32.mrf.mxu0 }
0x1687   :  { %v5247_v14 = vpop.f32.mrf.mxu0 }
0x16a4   :  { %v2906_v16 = vpop.permute.xlu1 %2905 }
0x16a5   :  { %v2908_v22 = vmul.f32 %v2906_v16, %v2754_v10 }
0x16a8   :  { %v2910_v17 = vpop.permute.xlu1 %2909 }
0x16a9   :  { %v2912_v23 = vmul.f32 %v2910_v17, %v2824_v12 }
0x16ab   :  { %v2913_v27 = vadd.f32 %v2912_v23, %v2908_v22 }
0x16ad   :  { %v2915_v28 = vadd.f32 %v2914_v25, %v2913_v27 }
0x16af   :  { %v2916_v29 = vmul.f32 %v5830_v24, %v2915_v28 }
0x16b1   :  { %v2918_v6 = vadd.f32 %v2917_v21, %v2916_v29 }
0x16b3   :  { %v6261_v31 = vadd.f32 %v2918_v6, %v5664_v19 }
0x16b5   :  { %5235 = vmatmul.mubr.msk.f32.vlgmr.msra.gmra.mxu1 %vm6547_vm14, %v6261_v31 }
0x16b6   :  { %5259 = vmatpush3.msk.msra.mxu1 %vm363_vm3, %v5745_v46  ;;  %5260 = vmatprep.mubr.msk.f32.mxu1 %vm5521_vm7, %v5520_v2 }
0x16b7   :  { %5268 = vmatprep.subr.mxu1 %v5520_v2 }
0x1775   :  { %v2990_v26 = vpop.f32.mrf.mxu1 }
0x1776   :  { %v3063_v35 = vadd.f32 %v3062_v13, %v2990_v26 }
0x1777   :  { %v5236_v30 = vpop.f32.mrf.mxu1 }
0x1778   :  { %v3068_v38 = vadd.f32 %v4714_v34, %v3063_v35 }
0x177a   :  { %5426 = vtanh.f32 %v3068_v38  ;;  %v3145_v39 = vsel %vm6548_vm15, %v3068_v38, -inf }
0x177b   :  { %3146 = vmax.xlane.f32.xlu1 %v3145_v39 }
0x1787   :  { %v6274_v41 = vpop.eup %5426 }
0x1788   :  { %3071 = vrot.lane.b32.xlu0 %v6274_v41, %s5523_s24 }
0x17fa   :  { %v3072_v42 = vpop.permute.xlu0 %3071 }
0x17fb   :  { %5251 = vmatmul.mubr.msk.f32.vlgmr.msra.gmra.mxu0 %vm277_vm8, %v3072_v42  ;;  %v4727_v42 = vld [vmem:[%s6524_s0 + $0xc] sm:$0x3] }
0x17fc   :  { %5254 = vmatpush3.msk.msra.mxu0 %vm363_vm3, %v5715_v37  ;;  %5255 = vmatprep.mubr.msk.f32.mxu0 %vm5521_vm7, %v5520_v2 }
0x17fd   :  { %5263 = vmatprep.subr.mxu0 %v5520_v2 }
0x1804   :  { %v3147_v43 = vpop.xlane.xlu1 %3146 }
0x1805   :  { %v3148_v45 = vsub.f32 %v3068_v38, %v3147_v43 }
0x1807   :  { %v3149_v47 = vmul.f32 1.442695, %v3148_v45 }
0x1809   :  { %5428 = vpow2.f32 %v3149_v47 }
0x1816   :  { %v5429_v49 = vpop.eup %5428 }
0x1817   :  { %3152 = vrot.lane.b32.xlu0 %v5429_v49, %s5524_s25 }
0x1889   :  { %v3153_v50 = vpop.permute.xlu0 %3152 }
0x188a   :  { %5256 = vmatmul.mubr.msk.f32.vlgmr.msra.gmra.mxu0 %vm360_vm10, %v3153_v50 }
0x188b   :  { %5264 = vmatpush3.msk.msra.mxu0 %vm363_vm3, %v5756_v48  ;;  %5265 = vmatprep.mubr.msk.f32.mxu0 %vm5521_vm7, %v5520_v2 }
0x188c   :  { %5273 = vmatprep.subr.mxu0 %v5520_v2 }
0x18bb   :  { %v6291_v52 = vpop.f32.mrf.mxu0 }
0x18bd   :  { %v5252_v53 = vpop.f32.mrf.mxu0 }
0x194a   :  { %v3222_v54 = vpop.f32.mrf.mxu0 }
0x194b   :  { %5430 = vrcp.f32 %v3222_v54 }
0x194c   :  { %v5257_v56 = vpop.f32.mrf.mxu0 }
0x1958   :  { %v5431_v57 = vpop.eup %5430 }
0x1959   :  { %3228 = vrot.lane.b32.xlu0 %v5431_v57, %s5525_s26 }
0x19cb   :  { %v3229_v8 = vpop.permute.xlu0 %3228 }
0x19cc   :  { %v3231_v9 = vmul.f32 %v5429_v49, %v3229_v8 }
0x19ce   :  { %3233 = vrot.lane.b32.xlu0 %v3231_v9, %s5524_s25 }
0x19d2   :  { %3447 = vrot.lane.b32.xlu0 %v6261_v31, %s5526_s27 }
0x1a40   :  { %v3234_v10 = vpop.permute.xlu0 %3233 }
0x1a41   :  { %5261 = vmatmul.mubr.msk.f32.vlgmr.msra.gmra.mxu1 %vm360_vm10, %v3234_v10  ;;  %5266 = vmatmul.mubr.msk.f32.vlgmr.msra.gmra.mxu0 %vm360_vm10, %v3234_v10 }
0x1a42   :  { %5269 = vmatpush3.msk.msra.mxu1 %vm363_vm3, %v5771_v51  ;;  %5270 = vmatprep.mubr.msk.f32.mxu1 %vm5521_vm7, %v5520_v2 }
0x1a43   :  { %5292 = vmatprep.subr.mxu1 %v5520_v2  ;;  %5274 = vmatpush3.msra.mxu0 %v6156_v55 }
0x1a44   :  { %v3448_v12 = vpop.permute.xlu0 %3447  ;;  %5275 = vmatprep.subr.mxu0 %v5520_v2  ;;  %5289 = vmatprep.mubr.msk.f32.mxu0 %vm5521_vm7, %v5520_v2 }
0x1a45   :  { %5271 = vmatmul.mubr.msk.f32.vlgmr.msra.gmra.mxu1 %vm360_vm10, %v3234_v10  ;;  %v3449_v15 = vsel %vm667_vm0, %v3448_v12, %v6261_v31  ;;  %5276 = vmatpush3.msra.mxu0 %v6168_v58 }
0x1a46   :  { %5293 = vmatpush3.msra.mxu1 %v6174_v59  ;;  %3450 = vrot.lane.b32.xlu0 %v3449_v15, %s5526_s27 }
0x1a47   :  { %5294 = vmatprep.subr.mxu1 %v5520_v2  ;;  %5300 = vmatprep.mubr.msk.f32.mxu1 %vm5521_vm7, %v5520_v2 }
0x1a48   :  { %5295 = vmatpush3.msra.mxu1 %v6184_v60  ;;  %5277 = vmatprep.subr.mxu0 %v5520_v2 }
0x1a49   :  { %5296 = vmatprep.subr.mxu1 %v5520_v2  ;;  %5278 = vmatpush3.msra.mxu0 %v6192_v61 }
0x1a4a   :  { %5297 = vmatpush3.msra.mxu1 %v6198_v62  ;;  %5279 = vmatprep.subr.mxu0 %v5520_v2 }
0x1a4b   :  { %5298 = vmatprep.subr.mxu1 %v5520_v2  ;;  %5280 = vmatpush3.msra.mxu0 %v6206_v63 }
0x1a4c   :  { %5299 = vmatpush3.msra.mxu1 %v6212_v0  ;;  %5281 = vmatprep.subr.mxu0 %v5520_v2 }
0x1a4d   :  { %5301 = vmatmul.mubr.msk.f32.vlgmr.msra.gmra.mxu1 %vm197_vm1, %v6274_v41  ;;  %5282 = vmatpush3.msra.mxu0 %v6221_v3 }
0x1a4e   :  { %5283 = vmatprep.subr.mxu0 %v5520_v2  ;;  %5303 = vmatprep.subr.mxu1 %v5520_v2 }
0x1a4f   :  { %5284 = vmatpush3.msra.mxu0 %v6229_v4  ;;  %5304 = vmatpush3.msk.msra.mxu1 %vm5696_vm2, %v5522_v33 }
0x1a50   :  { %5285 = vmatprep.subr.mxu0 %v5520_v2  ;;  %5305 = vmatprep.mubr.msk.f32.mxu1 %vm5521_vm7, %v5520_v2 }
0x1a51   :  { %5286 = vmatpush3.msra.mxu0 %v6241_v5  ;;  %5308 = vmatprep.subr.mxu1 %v5520_v2 }
0x1a52   :  { %5287 = vmatprep.subr.mxu0 %v5520_v2 }
0x1a53   :  { %5288 = vmatpush3.msra.mxu0 %v6249_v7 }
0x1a54   :  { %5313 = vmatprep.subr.mxu0 %v5520_v2 }
0x1ab8   :  { %v3451_v18 = vpop.permute.xlu0 %3450 }
0x1ab9   :  { %v3452_v20 = vsel %vm667_vm0, %v3451_v18, %v6261_v31 }
0x1aba   :  { %3458 = vrot.lane.b32.xlu1 %v3452_v20, %s5528_s29  ;;  %3454 = vrot.lane.b32.xlu0 %v3452_v20, %s5527_s28 }
0x1b01   :  { %v3303_v1 = vpop.f32.mrf.mxu1  ;;  %v3373_v13 = vpop.f32.mrf.mxu0 }
0x1b02   :  { %v3466_v35 = vmul.f32 %v3303_v1, %v6291_v52 }
0x1b03   :  { %v5262_v14 = vpop.f32.mrf.mxu1  ;;  %v5267_v16 = vpop.f32.mrf.mxu0 }
0x1b05   :  { %v3443_v17 = vpop.f32.mrf.mxu1 }
0x1b06   :  { %v3463_v6 = vmul.f32 %v3443_v17, %v6261_v31 }
0x1b07   :  { %v5272_v22 = vpop.f32.mrf.mxu1 }
0x1b0d   :  { %v3621_v23 = vpop.f32.mrf.mxu1 }
0x1b0f   :  { %v5302_v25 = vpop.f32.mrf.mxu1 }
0x1b2c   :  { %v3459_v27 = vpop.permute.xlu1 %3458  ;;  %v3455_v28 = vpop.permute.xlu0 %3454 }
0x1b2d   :  { %v3461_v21 = vmul.f32 %v3459_v27, %v3373_v13  ;;  %v3457_v29 = vmul.f32 %v3455_v28, %v3303_v1 }
0x1b2f   :  { %v3462_v26 = vadd.f32 %v3461_v21, %v3457_v29 }
0x1b31   :  { %v3464_v34 = vadd.f32 %v3463_v6, %v3462_v26  ;;  %v4740_v6 = vld [vmem:[%s6524_s0 + $0xe] sm:$0x3]  ;;  %s5530_s0 = smov [#allocation4]  }
0x1b33   :  { %v3465_v30 = vmul.f32 %v5830_v24, %v3464_v34 }
0x1b35   :  { %v3467_v38 = vadd.f32 %v3466_v35, %v3465_v30 }
0x1b37   :  { %v6352_v39 = vadd.f32 %v3467_v38, %v5664_v19 }
0x1b39   :  { %5290 = vmatmul.mubr.msk.f32.vlgmr.msra.gmra.mxu0 %vm6540_vm5, %v6352_v39 }
0x1b3a   :  { %5314 = vmatpush3.msk.msra.mxu0 %vm363_vm3, %v5745_v46  ;;  %5315 = vmatprep.mubr.msk.f32.mxu0 %vm5521_vm7, %v5520_v2 }
0x1b3b   :  { %5323 = vmatprep.subr.mxu0 %v5520_v2 }
0x1bf9   :  { %v3549_v31 = vpop.f32.mrf.mxu0 }
0x1bfa   :  { %v3622_v43 = vadd.f32 %v3621_v23, %v3549_v31 }
0x1bfb   :  { %v5291_v45 = vpop.f32.mrf.mxu0 }
0x1bfc   :  { %v3627_v47 = vadd.f32 %v4727_v42, %v3622_v43 }
0x1bfe   :  { %5432 = vtanh.f32 %v3627_v47  ;;  %v3704_v49 = vsel %vm6541_vm4, %v3627_v47, -inf }
0x1bff   :  { %3705 = vmax.xlane.f32.xlu0 %v3704_v49 }
0x1c0b   :  { %v6365_v50 = vpop.eup %5432 }
0x1c0c   :  { %3630 = vrot.lane.b32.xlu1 %v6365_v50, %s5523_s24 }
0x1c7e   :  { %v3631_v52 = vpop.permute.xlu1 %3630 }
0x1c7f   :  { %5306 = vmatmul.mubr.msk.f32.vlgmr.msra.gmra.mxu1 %vm277_vm8, %v3631_v52 }
0x1c80   :  { %5309 = vmatpush3.msk.msra.mxu1 %vm363_vm3, %v5715_v37  ;;  %5310 = vmatprep.mubr.msk.f32.mxu1 %vm5521_vm7, %v5520_v2 }
0x1c81   :  { %5318 = vmatprep.subr.mxu1 %v5520_v2 }
0x1c88   :  { %v3706_v53 = vpop.xlane.xlu0 %3705 }
0x1c89   :  { %v3707_v54 = vsub.f32 %v3627_v47, %v3706_v53 }
0x1c8b   :  { %v3708_v56 = vmul.f32 1.442695, %v3707_v54 }
0x1c8d   :  { %5434 = vpow2.f32 %v3708_v56 }
0x1c9a   :  { %v5435_v57 = vpop.eup %5434 }
0x1c9b   :  { %3711 = vrot.lane.b32.xlu1 %v5435_v57, %s5524_s25 }
0x1d0d   :  { %v3712_v8 = vpop.permute.xlu1 %3711 }
0x1d0e   :  { %5311 = vmatmul.mubr.msk.f32.vlgmr.msra.gmra.mxu1 %vm360_vm10, %v3712_v8 }
0x1d0f   :  { %5319 = vmatpush3.msk.msra.mxu1 %vm363_vm3, %v5756_v48  ;;  %5320 = vmatprep.mubr.msk.f32.mxu1 %vm5521_vm7, %v5520_v2 }
0x1d10   :  { %5328 = vmatprep.subr.mxu1 %v5520_v2 }
0x1d3f   :  { %v6382_v9 = vpop.f32.mrf.mxu1 }
0x1d41   :  { %v5307_v10 = vpop.f32.mrf.mxu1 }
0x1dce   :  { %v3781_v12 = vpop.f32.mrf.mxu1 }
0x1dcf   :  { %5436 = vrcp.f32 %v3781_v12 }
0x1dd0   :  { %v5312_v15 = vpop.f32.mrf.mxu1 }
0x1ddc   :  { %v5437_v18 = vpop.eup %5436 }
0x1ddd   :  { %3787 = vrot.lane.b32.xlu1 %v5437_v18, %s5525_s26 }
0x1e4f   :  { %v3788_v20 = vpop.permute.xlu1 %3787 }
0x1e50   :  { %v3790_v1 = vmul.f32 %v5435_v57, %v3788_v20 }
0x1e52   :  { %3792 = vrot.lane.b32.xlu1 %v3790_v1, %s5524_s25 }
0x1e56   :  { %4006 = vrot.lane.b32.xlu1 %v6352_v39, %s5526_s27 }
0x1ec4   :  { %v3793_v13 = vpop.permute.xlu1 %3792 }
0x1ec5   :  { %5316 = vmatmul.mubr.msk.f32.vlgmr.msra.gmra.mxu0 %vm360_vm10, %v3793_v13  ;;  %5321 = vmatmul.mubr.msk.f32.vlgmr.msra.gmra.mxu1 %vm360_vm10, %v3793_v13 }
0x1ec6   :  { %5324 = vmatpush3.msk.msra.mxu0 %vm363_vm3, %v5771_v51  ;;  %5325 = vmatprep.mubr.msk.f32.mxu0 %vm5521_vm7, %v5520_v2 }
0x1ec7   :  { %5347 = vmatprep.subr.mxu0 %v5520_v2  ;;  %5329 = vmatpush3.msra.mxu1 %v6156_v55 }
0x1ec8   :  { %v4007_v14 = vpop.permute.xlu1 %4006  ;;  %5330 = vmatprep.subr.mxu1 %v5520_v2  ;;  %5344 = vmatprep.mubr.msk.f32.mxu1 %vm5521_vm7, %v5520_v2 }
0x1ec9   :  { %5326 = vmatmul.mubr.msk.f32.vlgmr.msra.gmra.mxu0 %vm360_vm10, %v3793_v13  ;;  %v4008_v16 = vsel %vm667_vm0, %v4007_v14, %v6352_v39  ;;  %5331 = vmatpush3.msra.mxu1 %v6168_v58 }
0x1eca   :  { %5348 = vmatpush3.msra.mxu0 %v6174_v59  ;;  %4009 = vrot.lane.b32.xlu0 %v4008_v16, %s5526_s27 }
0x1ecb   :  { %5349 = vmatprep.subr.mxu0 %v5520_v2  ;;  %5355 = vmatprep.mubr.msk.f32.mxu0 %vm5521_vm7, %v5520_v2 }
0x1ecc   :  { %5350 = vmatpush3.msra.mxu0 %v6184_v60  ;;  %5332 = vmatprep.subr.mxu1 %v5520_v2 }
0x1ecd   :  { %5351 = vmatprep.subr.mxu0 %v5520_v2  ;;  %5333 = vmatpush3.msra.mxu1 %v6192_v61 }
0x1ece   :  { %5352 = vmatpush3.msra.mxu0 %v6198_v62  ;;  %5334 = vmatprep.subr.mxu1 %v5520_v2 }
0x1ecf   :  { %5353 = vmatprep.subr.mxu0 %v5520_v2  ;;  %5335 = vmatpush3.msra.mxu1 %v6206_v63 }
0x1ed0   :  { %5354 = vmatpush3.msra.mxu0 %v6212_v0  ;;  %5336 = vmatprep.subr.mxu1 %v5520_v2 }
0x1ed1   :  { %5356 = vmatmul.mubr.msk.f32.vlgmr.msra.gmra.mxu0 %vm197_vm1, %v6365_v50  ;;  %5337 = vmatpush3.msra.mxu1 %v6221_v3  ;;  %vm6550_vm1 = vmmov %vm6541_vm4 }
0x1ed2   :  { %5338 = vmatprep.subr.mxu1 %v5520_v2  ;;  %5358 = vmatprep.subr.mxu0 %v5520_v2 }
0x1ed3   :  { %5339 = vmatpush3.msra.mxu1 %v6229_v4  ;;  %5359 = vmatpush3.msk.msra.mxu0 %vm5696_vm2, %v5522_v33  ;;  %vm6549_vm2 = vmmov %vm6540_vm5 }
0x1ed4   :  { %5340 = vmatprep.subr.mxu1 %v5520_v2  ;;  %5360 = vmatprep.mubr.msk.f32.mxu0 %vm5521_vm7, %v5520_v2 }
0x1ed5   :  { %5341 = vmatpush3.msra.mxu1 %v6241_v5  ;;  %5363 = vmatprep.subr.mxu0 %v5520_v2 }
0x1ed6   :  { %5342 = vmatprep.subr.mxu1 %v5520_v2 }
0x1ed7   :  { %5343 = vmatpush3.msra.mxu1 %v6249_v7 }
0x1ed8   :  { %5368 = vmatprep.subr.mxu1 %v5520_v2 }
0x1f3c   :  { %v4010_v55 = vpop.permute.xlu0 %4009 }
0x1f3d   :  { %v4011_v32 = vsel %vm667_vm0, %v4010_v55, %v6352_v39 }
0x1f3e   :  { %4013 = vrot.lane.b32.xlu1 %v4011_v32, %s5527_s28 }
0x1f42   :  { %4017 = vrot.lane.b32.xlu1 %v4011_v32, %s5528_s29 }
0x1f85   :  { %v3862_v33 = vpop.f32.mrf.mxu0  ;;  %v3932_v58 = vpop.f32.mrf.mxu1 }
0x1f86   :  { %v4025_v25 = vmul.f32 %v3862_v33, %v6382_v9  ;;  %v5529_v9 = vmov 1983009808  }
0x1f87   :  { %v5317_v59 = vpop.f32.mrf.mxu0  ;;  %v5322_v60 = vpop.f32.mrf.mxu1  ;;  %v1241_v10 = vunpack.c.l.s4 %v5529_v9 }
0x1f89   :  { %v4002_v61 = vpop.f32.mrf.mxu0  ;;  %v1242_v12 = vunpack.c.0.s8 %v1241_v10 }
0x1f8a   :  { %v4022_v17 = vmul.f32 %v4002_v61, %v6352_v39 }
0x1f8b   :  { %v5327_v62 = vpop.f32.mrf.mxu0  ;;  %v1245_v18 = vsub.s32 %v1242_v12, %v5626_v11 }
0x1f8d   :  { %v1246_v20 = vrot.slane %v5848_v36, %v1245_v18  ;;  %v3475_v1 = vrot.slane %v6274_v41, %v1245_v18 }
0x1f91   :  { %v4180_v63 = vpop.f32.mrf.mxu0 }
0x1f93   :  { %v5357_v0 = vpop.f32.mrf.mxu0 }
0x1fb0   :  { %v4014_v3 = vpop.permute.xlu1 %4013 }
0x1fb1   :  { %v4016_v5 = vmul.f32 %v4014_v3, %v3862_v33 }
0x1fb4   :  { %v4018_v4 = vpop.permute.xlu1 %4017 }
0x1fb5   :  { %v4020_v7 = vmul.f32 %v4018_v4, %v3932_v58 }
0x1fb7   :  { %v4021_v22 = vadd.f32 %v4020_v7, %v4016_v5 }
0x1fb9   :  { %v4023_v23 = vadd.f32 %v4022_v17, %v4021_v22 }
0x1fbb   :  { %v4024_v27 = vmul.f32 %v5830_v24, %v4023_v23 }
0x1fbd   :  { %v4026_v28 = vadd.f32 %v4025_v25, %v4024_v27 }
0x1fbf   :  { %v6443_v21 = vadd.f32 %v4026_v28, %v5664_v19 }
0x1fc1   :  { %5345 = vmatmul.mubr.msk.f32.vlgmr.msra.gmra.mxu1 %vm6549_vm2, %v6443_v21 }
0x1fc2   :  { %5369 = vmatpush3.msk.msra.mxu1 %vm363_vm3, %v5745_v46  ;;  %5370 = vmatprep.mubr.msk.f32.mxu1 %vm5521_vm7, %v5520_v2 }
0x1fc3   :  { %5378 = vmatprep.subr.mxu1 %v5520_v2 }
0x2081   :  { %v4108_v29 = vpop.f32.mrf.mxu1 }
0x2082   :  { %v4181_v26 = vadd.f32 %v4180_v63, %v4108_v29 }
0x2083   :  { %v5346_v34 = vpop.f32.mrf.mxu1 }
0x2084   :  { %v4186_v35 = vadd.f32 %v4740_v6, %v4181_v26 }
0x2086   :  { %5438 = vtanh.f32 %v4186_v35  ;;  %v4263_v30 = vsel %vm6550_vm1, %v4186_v35, -inf }
0x2087   :  { %4264 = vmax.xlane.f32.xlu1 %v4263_v30 }
0x2093   :  { %v6456_v38 = vpop.eup %5438 }
0x2094   :  { %4189 = vrot.lane.b32.xlu0 %v6456_v38, %s5523_s24  ;;  %4598 = vst.msk [vmem:[#allocation4] sm:$0x3] %vm6551_vm9, %v6456_v38  ;;  %s4617_s24 = sshll.u32 %s5530_s0, 4  ;;  %s4618_s24 = int_to_ptr.vmem [resolvable:$true] %s4617_s24 }
0x2095   :  { %s5456_s22 = scalar_lea.vmem %s4618_s24, 32  ;;  %p5461_p1 = scmp.lt.s32.totalorder %s4618_s24, %s4618_s24 }
0x2096   :  { %p5457_p0 = scmp.ne.s32.totalorder %s4618_s24, %s5456_s22  ;;  %p5462_p2 = scmp.lt.s32.totalorder %s5456_s22, %s5456_s22 }
0x2098   :  { %p5463_p3 = por %p5462_p2, %p5461_p1 }
0x209a   :  { %p5464_p4 = pnand %p5463_p3, %p5457_p0 }
0x2106   :  { %v4190_v46 = vpop.permute.xlu0 %4189 }
0x2107   :  { %5361 = vmatmul.mubr.msk.f32.vlgmr.msra.gmra.mxu0 %vm277_vm8, %v4190_v46 }
0x2108   :  { %5364 = vmatpush3.msk.msra.mxu0 %vm363_vm3, %v5715_v37  ;;  %5365 = vmatprep.mubr.msk.f32.mxu0 %vm5521_vm7, %v5520_v2 }
0x2109   :  { %5373 = vmatprep.subr.mxu0 %v5520_v2 }
0x2110   :  { %v4265_v39 = vpop.xlane.xlu1 %4264 }
0x2111   :  { %v4266_v31 = vsub.f32 %v4186_v35, %v4265_v39 }
0x2113   :  { %v4267_v42 = vmul.f32 1.442695, %v4266_v31 }
0x2115   :  { %5440 = vpow2.f32 %v4267_v42 }
0x2122   :  { %v5441_v43 = vpop.eup %5440 }
0x2123   :  { %4270 = vrot.lane.b32.xlu0 %v5441_v43, %s5524_s25 }
0x2195   :  { %v4271_v45 = vpop.permute.xlu0 %4270 }
0x2196   :  { %5366 = vmatmul.mubr.msk.f32.vlgmr.msra.gmra.mxu0 %vm360_vm10, %v4271_v45 }
0x2197   :  { %5374 = vmatpush3.msk.msra.mxu0 %vm363_vm3, %v5756_v48  ;;  %5375 = vmatprep.mubr.msk.f32.mxu0 %vm5521_vm7, %v5520_v2 }
0x21c7   :  { %v6474_v37 = vpop.f32.mrf.mxu0 }
0x21c9   :  { %v5362_v47 = vpop.f32.mrf.mxu0 }
0x2256   :  { %v4340_v49 = vpop.f32.mrf.mxu0 }
0x2257   :  { %5442 = vrcp.f32 %v4340_v49 }
0x2258   :  { %v5367_v52 = vpop.f32.mrf.mxu0 }
0x2264   :  { %v5443_v53 = vpop.eup %5442 }
0x2265   :  { %4346 = vrot.lane.b32.xlu0 %v5443_v53, %s5525_s26 }
0x22d7   :  { %v4347_v54 = vpop.permute.xlu0 %4346 }
0x22d8   :  { %v4349_v56 = vmul.f32 %v5441_v43, %v4347_v54 }
0x22da   :  { %4351 = vrot.lane.b32.xlu0 %v4349_v56, %s5524_s25 }
0x22de   :  { %4565 = vrot.lane.b32.xlu0 %v6443_v21, %s5526_s27 }
0x234c   :  { %v4352_v48 = vpop.permute.xlu0 %4351 }
0x234d   :  { %5371 = vmatmul.mubr.msk.f32.vlgmr.msra.gmra.mxu1 %vm360_vm10, %v4352_v48  ;;  %5376 = vmatmul.mubr.msk.f32.vlgmr.msra.gmra.mxu0 %vm360_vm10, %v4352_v48 }
0x234e   :  { %5379 = vmatpush3.msk.msra.mxu1 %vm363_vm3, %v5771_v51  ;;  %5380 = vmatprep.mubr.msk.f32.mxu1 %vm5521_vm7, %v5520_v2  ;;  %v2366_v2 = vrot.slane %v6030_v44, %v1245_v18 }
0x2350   :  { %v4566_v57 = vpop.permute.xlu0 %4565 }
0x2351   :  { %5381 = vmatmul.mubr.msk.f32.vlgmr.msra.gmra.mxu1 %vm360_vm10, %v4352_v48  ;;  %v4567_v8 = vsel %vm667_vm0, %v4566_v57, %v6443_v21 }
0x2352   :  { %4568 = vrot.lane.b32.xlu0 %v4567_v8, %s5526_s27 }
0x23c4   :  { %v4569_v15 = vpop.permute.xlu0 %4568 }
0x23c5   :  { %v4570_v51 = vsel %vm667_vm0, %v4569_v15, %v6443_v21 }
0x23c6   :  { %4576 = vrot.lane.b32.xlu1 %v4570_v51, %s5528_s29  ;;  %4572 = vrot.lane.b32.xlu0 %v4570_v51, %s5527_s28 }
0x23ca   :  { %2367 = vrot.lane.b32.xlu1 %v2366_v2, %s5524_s25  ;;  %1247 = vrot.lane.b32.xlu0 %v1246_v20, %s5525_s26 }
0x23ce   :  { %3476 = vrot.lane.b32.xlu0 %v3475_v1, %s5525_s26 }
0x23cf   :  { %5467 = shalt.err (!%p5464_p4)
}
0x23d0   :  { %4620 = dma.vmem_to_hbm [thread:$0]  %s4618_s24, 32, %s6529_s5, [#allocation5]   ;;  %v1806_v11 = vrot.slane %v5939_v40, %v1245_v18  ;;  %v4034_v36 = vrot.slane %v6365_v50, %v1245_v18  ;;  %v4593_v44 = vrot.slane %v6456_v38, %v1245_v18  ;;  %vm1250_vm7 = vcmask 517376  }
0x23d1   :  { %s5531_s5 = smov [#allocation6]   ;;  %vm1810_vm8 = vcmask 779776   ;;  %vm4599_vm3 = vcmask 517120   ;;  %vm2370_vm10 = vcmask 1042176  }
0x23d2   :  { %1807 = vrot.lane.b32.xlu0 %v1806_v11, %s5526_s27 }
0x23d6   :  { %4035 = vrot.lane.b32.xlu0 %v4034_v36, %s5526_s27 }
0x23da   :  { %4594 = vrot.lane.b32.xlu0 %v4593_v44, %s5524_s25  ;;  %s4627_s25 = sshll.u32 %s5531_s5, 4  ;;  %s4628_s25 = int_to_ptr.vmem [resolvable:$true] %s4627_s25 }
0x23db   :  { %s5476_s26 = scalar_lea.vmem %s4628_s25, 32  ;;  %p5481_p6 = scmp.lt.s32.totalorder %s4628_s25, %s4628_s25 }
0x23dc   :  { %p5477_p5 = scmp.ne.s32.totalorder %s4628_s25, %s5476_s26  ;;  %p5482_p7 = scmp.lt.s32.totalorder %s5476_s26, %s5476_s26 }
0x23de   :  { %p5483_p8 = por %p5482_p7, %p5481_p6 }
0x23e0   :  { %p5484_p9 = pnand %p5483_p8, %p5477_p5 }
0x240d   :  { %v4421_v41 = vpop.f32.mrf.mxu1  ;;  %v4491_v13 = vpop.f32.mrf.mxu0 }
0x240e   :  { %v4584_v63 = vmul.f32 %v4421_v41, %v6474_v37 }
0x240f   :  { %v5372_v14 = vpop.f32.mrf.mxu1  ;;  %v5377_v16 = vpop.f32.mrf.mxu0 }
0x2411   :  { %v4561_v55 = vpop.f32.mrf.mxu1 }
0x2412   :  { %v4581_v60 = vmul.f32 %v4561_v55, %v6443_v21 }
0x2413   :  { %v5382_v32 = vpop.f32.mrf.mxu1 }
0x2438   :  { %v4577_v33 = vpop.permute.xlu1 %4576  ;;  %v4573_v58 = vpop.permute.xlu0 %4572 }
0x2439   :  { %v4579_v59 = vmul.f32 %v4577_v33, %v4491_v13  ;;  %v4575_v40 = vmul.f32 %v4573_v58, %v4421_v41 }
0x243b   :  { %v4580_v50 = vadd.f32 %v4579_v59, %v4575_v40 }
0x243c   :  { %v1248_v61 = vpop.permute.xlu0 %1247  ;;  %v2368_v17 = vpop.permute.xlu1 %2367 }
0x243d   :  { %v4582_v62 = vadd.f32 %v4581_v60, %v4580_v50  ;;  %1251 = vst.msk [vmem:[#allocation2] sm:$0x3] %vm1250_vm7, %v1248_v61 }
0x243f   :  { %v4583_v0 = vmul.f32 %v5830_v24, %v4582_v62 }
0x2440   :  { %v3477_v3 = vpop.permute.xlu0 %3476 }
0x2441   :  { %3479 = vst.msk [vmem:[#allocation2 + $0x2] sm:$0x3] %vm1250_vm7, %v3477_v3  ;;  %v4585_v4 = vadd.f32 %v4584_v63, %v4583_v0 }
0x2443   :  { %v4586_v5 = vadd.f32 %v4585_v4, %v5664_v19 }
0x2444   :  { %v1808_v7 = vpop.permute.xlu0 %1807 }
0x2445   :  { %1811 = vst.msk [vmem:[#allocation2] sm:$0x3] %vm1810_vm8, %v1808_v7 }
0x2446   :  { %4600 = vst.msk [vmem:[#allocation6] sm:$0x3] %vm4599_vm3, %v4586_v5 }
0x2447   :  { %2371 = vst.msk [vmem:[#allocation2] sm:$0x3] %vm2370_vm10, %v2368_v17 }
0x2448   :  { %5487 = shalt.err (!%p5484_p9)
}
0x2449   :  { %4630 = dma.vmem_to_hbm [thread:$0]  %s4628_s25, 32, %s6530_s6, [#allocation5]   ;;  %v4036_v19 = vpop.permute.xlu0 %4035 }
0x244a   :  { %s5532_s30 = smov [#allocation2]   ;;  %4038 = vst.msk [vmem:[#allocation2 + $0x2] sm:$0x3] %vm1810_vm8, %v4036_v19 }
0x244b   :  { %s4607_s7 = sshll.u32 %s5532_s30, 4  ;;  %s4608_s7 = int_to_ptr.vmem [resolvable:$true] %s4607_s7 }
0x244c   :  { %s5496_s8 = scalar_lea.vmem %s4608_s7, 64  ;;  %p5501_p11 = scmp.lt.s32.totalorder %s4608_s7, %s4608_s7 }
0x244d   :  { %v4595_v24 = vpop.permute.xlu0 %4594  ;;  %p5497_p10 = scmp.ne.s32.totalorder %s4608_s7, %s5496_s8  ;;  %p5502_p12 = scmp.lt.s32.totalorder %s5496_s8, %s5496_s8 }
0x244e   :  { %4597 = vst.msk [vmem:[#allocation2 + $0x2] sm:$0x3] %vm2370_vm10, %v4595_v24 }
0x244f   :  { %p5503_p13 = por %p5502_p12, %p5501_p11 }
0x2451   :  { %p5504_p0 = pnand %p5503_p13, %p5497_p10 }
0x2453   :  { %5507 = shalt.err (!%p5504_p0)
}
0x2454   :  { %4610 = dma.vmem_to_hbm [thread:$0]  %s4608_s7, 64, %s6528_s4, [#allocation3]  }
0x2455   :  { %5516 = dma.done.wait [#allocation3], 64  }
0x2456   :  { %5517 = vsyncadd [#allocation3], 4294967232 }
0x2457   :  { %5518 = dma.done.wait [#allocation5], 64  }
0x2458   :  { %5519 = vsyncadd [#allocation5], 4294967232 }
0x2459   :  { %4640 = vsyncpa [#allocation3], 1 }
0x245a   :  { %4641 = vsyncpa [#allocation5], 1 }

</bundles_post_ra>
